<compile_context>
chip_gen: v6e
topology: v6e:2x2x1
jax: 0.10.0
libtpu: 0.0.40
codegen_flags: <defaults>
</compile_context>

<pallas_src>
import functools
import numpy as np
import jax
import jax.numpy as jnp
from jax.experimental import pallas as pl
from jax.experimental.pallas import tpu as pltpu

DM_D = 10                       # self.dm_d = 10 in the PyTorch module
NH = 512                        # nh = 512
BN_EPS = 1e-5
LRELU_SLOPE = 0.01              # nn.LeakyReLU() default negative_slope
VMEM_LIMIT = 16 * 1024 * 1024   # safe on v5e / v6e / v7x; kernel needs ~1.1 MB


# ------------------------------- Pallas kernel -------------------------------

def _dn_dis_kernel(x_ref, d_ref, w1x_ref, w1d_ref, w2_hbm, w3_hbm,
                   g1_ref, b1_ref, g2_ref, b2_ref, g3_ref, b3_ref,
                   wl_ref, bl_ref, out_ref,
                   w2_buf, w3_buf, dma_sem, *, eps, neg_slope):
    """Entire DN_Dis forward for one (B, nz) block, fully resident in VMEM."""

    # Start the two big weight DMAs (512 KB each) immediately so they overlap with the
    # layer-1 / layer-2 GEMM + BN compute instead of gating kernel entry.
    w2_cp = pltpu.make_async_copy(w2_hbm, w2_buf, dma_sem.at[0])
    w3_cp = pltpu.make_async_copy(w3_hbm, w3_buf, dma_sem.at[1])
    w2_cp.start()
    w3_cp.start()

    def bn_lrelu(y, g_ref, b_ref):
        # Train-mode BatchNorm2d over the row axis (N*H*W), biased variance,
        # two-pass (mean, then centered sum of squares) for numerical robustness.
        cnt = jnp.float32(y.shape[0])
        mean = jnp.sum(y, axis=0, keepdims=True) / cnt
        c = y - mean
        var = jnp.sum(c * c, axis=0, keepdims=True) / cnt
        a = c * jax.lax.rsqrt(var + eps) * g_ref[...] + b_ref[...]
        return jnp.maximum(a, neg_slope * a)          # LeakyReLU

    # Layer 1: 1x1 conv == GEMM on the MXU (bf16 operands, f32 accumulation) plus the
    # rank-1 domain term on the VPU (the 10 broadcast domain channels are identical, so
    # their conv contribution collapses to d * sum(domain columns of w1)).
    h = jnp.dot(x_ref[...].astype(jnp.bfloat16), w1x_ref[...],
                preferred_element_type=jnp.float32)
    h = h + d_ref[...] * w1d_ref[...]
    h = bn_lrelu(h, g1_ref, b1_ref)

    # Layer 2 (wait only for its own weight copy; DMA overlapped with layer 1).
    w2_cp.wait()
    h = jnp.dot(h.astype(jnp.bfloat16), w2_buf[...],
                preferred_element_type=jnp.float32)
    h = bn_lrelu(h, g2_ref, b2_ref)

    # Layer 3 (its weight copy overlapped with layers 1-2).
    w3_cp.wait()
    h = jnp.dot(h.astype(jnp.bfloat16), w3_buf[...],
                preferred_element_type=jnp.float32)
    h = bn_lrelu(h, g3_ref, b3_ref)                   # (B, NH) == nnSqueeze(net1(x))

    # net2: Linear(NH, 1) as broadcast-multiply + lane reduction; sigmoid via tanh
    # (EUP path, saturates cleanly for large |logit| instead of overflowing exp).
    logit = jnp.sum(h * wl_ref[...], axis=1, keepdims=True) + bl_ref[...]
    out_ref[...] = 0.5 * (jnp.tanh(0.5 * logit) + 1.0)


# ---------------------- one-time weight preprocessing -------------------------

def prepare_params(raw, *, nz):
    """Run ONCE outside the jitted forward: transpose PyTorch-layout conv weights to
    GEMM layout, cast to bf16, and fold the 10 identical domain-channel columns of
    conv1 into a single (1, NH) f32 rank-1 vector.  Conv biases of the three BN layers
    are intentionally absent: a per-channel bias added immediately before train-mode
    BatchNorm is exactly cancelled by the batch-mean subtraction."""
    nin = nz + DM_D
    w1_full = raw["c1_w"].reshape(NH, nin)                        # (out, in) f32
    prep = {
        "w1x": jnp.transpose(w1_full[:, :nz]).astype(jnp.bfloat16),          # (nz, NH)
        "w1d": jnp.sum(w1_full[:, nz:], axis=1, dtype=jnp.float32)[None, :],  # (1, NH)
        "w2": jnp.transpose(raw["c2_w"].reshape(NH, NH)).astype(jnp.bfloat16),
        "w3": jnp.transpose(raw["c3_w"].reshape(NH, NH)).astype(jnp.bfloat16),
        "g1": raw["bn1_g"].reshape(1, NH).astype(jnp.float32),
        "b1": raw["bn1_b"].reshape(1, NH).astype(jnp.float32),
        "g2": raw["bn2_g"].reshape(1, NH).astype(jnp.float32),
        "b2": raw["bn2_b"].reshape(1, NH).astype(jnp.float32),
        "g3": raw["bn3_g"].reshape(1, NH).astype(jnp.float32),
        "b3": raw["bn3_b"].reshape(1, NH).astype(jnp.float32),
        "wl": raw["fc_w"].reshape(1, NH).astype(jnp.float32),
        "bl": raw["fc_b"].reshape(1, 1).astype(jnp.float32),
    }
    return prep


# --------------------------------- wrapper -----------------------------------

def dn_dis_forward(prep, x, domain_index, *, domain_num,
                   eps=BN_EPS, neg_slope=LRELU_SLOPE):
    """x: (B, nz, 1, 1) NCHW latent; domain_index: (B, 1) int. Returns (B, 1) sigmoid."""
    B, nz = x.shape[0], x.shape[1]
    xf = x.reshape(B, nz).astype(jnp.float32)
    d = domain_index.reshape(B, 1).astype(jnp.float32) / jnp.float32(domain_num - 1)

    args = (xf, d, prep["w1x"], prep["w1d"], prep["w2"], prep["w3"],
            prep["g1"], prep["b1"], prep["g2"], prep["b2"],
            prep["g3"], prep["b3"], prep["wl"], prep["bl"])

    def vmem_full(a):
        nd = a.ndim
        return pl.BlockSpec(a.shape, lambda i, _nd=nd: (0,) * _nd)

    hbm = pl.BlockSpec(memory_space=pl.ANY)   # raw HBM ref; DMA'd manually in-kernel
    in_specs = [vmem_full(xf), vmem_full(d),
                vmem_full(prep["w1x"]), vmem_full(prep["w1d"]),
                hbm, hbm,                     # w2, w3
                vmem_full(prep["g1"]), vmem_full(prep["b1"]),
                vmem_full(prep["g2"]), vmem_full(prep["b2"]),
                vmem_full(prep["g3"]), vmem_full(prep["b3"]),
                vmem_full(prep["wl"]), vmem_full(prep["bl"])]

    # NOTE: at B=8 the output is only 8 floats; the lane-dense-output optimization and a
    # second-TensorCore split only become worthwhile if B is batched up by the caller.
    out = pl.pallas_call(
        functools.partial(_dn_dis_kernel, eps=eps, neg_slope=neg_slope),
        out_shape=jax.ShapeDtypeStruct((B, 1), jnp.float32),
        grid=(1,),
        in_specs=in_specs,
        out_specs=pl.BlockSpec((B, 1), lambda i: (0, 0)),
        scratch_shapes=[pltpu.VMEM((NH, NH), jnp.bfloat16),     # w2 landing buffer
                        pltpu.VMEM((NH, NH), jnp.bfloat16),     # w3 landing buffer
                        pltpu.SemaphoreType.DMA((2,))],
        compiler_params=pltpu.CompilerParams(
            dimension_semantics=("arbitrary",),
            vmem_limit_bytes=VMEM_LIMIT,
        ),
    )(*args)
    return out                                                        # (B, 1)


# -------------------------- pure-JAX reference check --------------------------

def reference_forward(raw, x, domain_index, *, domain_num):
    """Same math (incl. the bf16 matmul casts and rank-1 domain fold) in plain JAX."""
    B, nz = x.shape[0], x.shape[1]
    d = domain_index.reshape(B, 1).astype(jnp.float32) / jnp.float32(domain_num - 1)
    xr = x.reshape(B, nz).astype(jnp.float32)

    w1_full = raw["c1_w"].reshape(NH, nz + DM_D)
    w1x = jnp.transpose(w1_full[:, :nz]).astype(jnp.bfloat16)
    w1d = jnp.sum(w1_full[:, nz:], axis=1, dtype=jnp.float32)[None, :]
    w2 = jnp.transpose(raw["c2_w"].reshape(NH, NH)).astype(jnp.bfloat16)
    w3 = jnp.transpose(raw["c3_w"].reshape(NH, NH)).astype(jnp.bfloat16)

    def bn_lrelu(y, g, b):
        mean = jnp.mean(y, axis=0, keepdims=True)
        c = y - mean
        var = jnp.mean(c * c, axis=0, keepdims=True)
        a = c * jax.lax.rsqrt(var + BN_EPS) * g[None, :] + b[None, :]
        return jnp.maximum(a, LRELU_SLOPE * a)

    h = jnp.dot(xr.astype(jnp.bfloat16), w1x, preferred_element_type=jnp.float32)
    h = h + d * w1d
    h = bn_lrelu(h, raw["bn1_g"], raw["bn1_b"])
    h = bn_lrelu(jnp.dot(h.astype(jnp.bfloat16), w2, preferred_element_type=jnp.float32),
                 raw["bn2_g"], raw["bn2_b"])
    h = bn_lrelu(jnp.dot(h.astype(jnp.bfloat16), w3, preferred_element_type=jnp.float32),
                 raw["bn3_g"], raw["bn3_b"])
    logit = h @ jnp.transpose(raw["fc_w"]) + raw["fc_b"][None, :]
    return jax.nn.sigmoid(logit)


# --------------------------------- param init ---------------------------------

def init_params(key, nz=16):
    nin = nz + DM_D
    ks = jax.random.split(key, 4)

    def conv_w(k, cout, cin):
        return jax.random.normal(k, (cout, cin, 1, 1), jnp.float32) / np.sqrt(cin)

    p = {}
    p["c1_w"] = conv_w(ks[0], NH, nin)
    p["c2_w"] = conv_w(ks[1], NH, NH)
    p["c3_w"] = conv_w(ks[2], NH, NH)
    # Conv2d biases for the BN layers are omitted: a per-channel bias added right before
    # train-mode BatchNorm is exactly cancelled by the batch-mean subtraction.
    for n in ("bn1", "bn2", "bn3"):
        p[n + "_g"] = jnp.ones((NH,), jnp.float32)
        p[n + "_b"] = jnp.zeros((NH,), jnp.float32)
    kw_, kb_ = jax.random.split(ks[3])
    p["fc_w"] = jax.random.normal(kw_, (1, NH), jnp.float32) / np.sqrt(NH)
    p["fc_b"] = 0.01 * jax.random.normal(kb_, (1,), jnp.float32)
    return p


# ------------------------------------ main -------------------------------------

if __name__ == "__main__":
    B, nz, domain_num = 8, 16, 4      # x: B x nz x 1 x 1 latent features

    key = jax.random.PRNGKey(0)
    kp, kx, kd = jax.random.split(key, 3)
    raw = init_params(kp, nz=nz)

    # One-time weight preprocessing OUTSIDE the jitted forward (perf-review item #1):
    # the transpose / bf16 cast / domain-column fold run exactly once here.
    prep = jax.block_until_ready(prepare_params(raw, nz=nz))

    x = jax.random.normal(kx, (B, nz, 1, 1), jnp.float32)
    domain_index = jax.random.randint(kd, (B, 1), 0, domain_num).astype(jnp.int32)

    fwd = jax.jit(functools.partial(dn_dis_forward, domain_num=domain_num))
    y = jax.block_until_ready(fwd(prep, x, domain_index))

    assert y.shape == (B, 1), y.shape
    assert bool(jnp.isfinite(y).all())
    assert bool((y >= 0.0).all()) and bool((y <= 1.0).all())

    y_ref = jax.block_until_ready(
        reference_forward(raw, x, domain_index, domain_num=domain_num))
    err = float(np.max(np.abs(np.asarray(y) - np.asarray(y_ref))))
    assert err < 5e-3, err

    print("KERNEL_OK")
</pallas_src>

<mosaic_0001>
module attributes {stable_mosaic.version = 11 : i64} {
  func.func @_dn_dis_kernel(%arg0: i32, %arg1: memref<8x16xf32, #tpu.memory_space<vmem>>, %arg2: memref<8x1xf32, #tpu.memory_space<vmem>>, %arg3: memref<16x512xbf16, #tpu.memory_space<vmem>>, %arg4: memref<1x512xf32, #tpu.memory_space<vmem>>, %arg5: memref<512x512xbf16, #tpu.memory_space<any>>, %arg6: memref<512x512xbf16, #tpu.memory_space<any>>, %arg7: memref<1x512xf32, #tpu.memory_space<vmem>>, %arg8: memref<1x512xf32, #tpu.memory_space<vmem>>, %arg9: memref<1x512xf32, #tpu.memory_space<vmem>>, %arg10: memref<1x512xf32, #tpu.memory_space<vmem>>, %arg11: memref<1x512xf32, #tpu.memory_space<vmem>>, %arg12: memref<1x512xf32, #tpu.memory_space<vmem>>, %arg13: memref<1x512xf32, #tpu.memory_space<vmem>>, %arg14: memref<1x1xf32, #tpu.memory_space<vmem>>, %arg15: memref<8x1xf32, #tpu.memory_space<vmem>>, %arg16: memref<512x512xbf16, #tpu.memory_space<vmem>>, %arg17: memref<512x512xbf16, #tpu.memory_space<vmem>>, %arg18: memref<2x!tpu.dma_semaphore, #tpu.memory_space<semaphore_mem>>) attributes {dimension_semantics = [#tpu.dimension_semantics<arbitrary>], iteration_bounds = array<i64: 1>, scalar_prefetch = 0 : i64, scratch_operands = 3 : i64, tpu.core_type = #tpu.core_type<tc>, window_params = [{pipeline_mode = #tpu.pipeline_mode<synchronous>, transform_indices = @transform_0, window_bounds = array<i64: 8, 16>}, {pipeline_mode = #tpu.pipeline_mode<synchronous>, transform_indices = @transform_1, window_bounds = array<i64: 8, 1>}, {pipeline_mode = #tpu.pipeline_mode<synchronous>, transform_indices = @transform_2, window_bounds = array<i64: 16, 512>}, {pipeline_mode = #tpu.pipeline_mode<synchronous>, transform_indices = @transform_3, window_bounds = array<i64: 1, 512>}, {}, {}, {pipeline_mode = #tpu.pipeline_mode<synchronous>, transform_indices = @transform_6, window_bounds = array<i64: 1, 512>}, {pipeline_mode = #tpu.pipeline_mode<synchronous>, transform_indices = @transform_7, window_bounds = array<i64: 1, 512>}, {pipeline_mode = #tpu.pipeline_mode<synchronous>, transform_indices = @transform_8, window_bounds = array<i64: 1, 512>}, {pipeline_mode = #tpu.pipeline_mode<synchronous>, transform_indices = @transform_9, window_bounds = array<i64: 1, 512>}, {pipeline_mode = #tpu.pipeline_mode<synchronous>, transform_indices = @transform_10, window_bounds = array<i64: 1, 512>}, {pipeline_mode = #tpu.pipeline_mode<synchronous>, transform_indices = @transform_11, window_bounds = array<i64: 1, 512>}, {pipeline_mode = #tpu.pipeline_mode<synchronous>, transform_indices = @transform_12, window_bounds = array<i64: 1, 512>}, {pipeline_mode = #tpu.pipeline_mode<synchronous>, transform_indices = @transform_13, window_bounds = array<i64: 1, 1>}, {pipeline_mode = #tpu.pipeline_mode<synchronous>, transform_indices = @transform_14, window_bounds = array<i64: 8, 1>}]} {
    %c0_i32 = arith.constant 0 : i32
    %0 = tpu.memref_slice %arg18[%c0_i32] : memref<2x!tpu.dma_semaphore, #tpu.memory_space<semaphore_mem>> -> memref<1x!tpu.dma_semaphore, #tpu.memory_space<semaphore_mem>>
    %1 = tpu.memref_squeeze %0 : memref<1x!tpu.dma_semaphore, #tpu.memory_space<semaphore_mem>> -> memref<!tpu.dma_semaphore, #tpu.memory_space<semaphore_mem>>
    tpu.enqueue_dma source(%arg5 : memref<512x512xbf16, #tpu.memory_space<any>>) target(%arg16 : memref<512x512xbf16, #tpu.memory_space<vmem>>) target_semaphore(%1 : memref<!tpu.dma_semaphore, #tpu.memory_space<semaphore_mem>>)
    %c1_i32 = arith.constant 1 : i32
    %2 = tpu.memref_slice %arg18[%c1_i32] : memref<2x!tpu.dma_semaphore, #tpu.memory_space<semaphore_mem>> -> memref<1x!tpu.dma_semaphore, #tpu.memory_space<semaphore_mem>>
    %3 = tpu.memref_squeeze %2 : memref<1x!tpu.dma_semaphore, #tpu.memory_space<semaphore_mem>> -> memref<!tpu.dma_semaphore, #tpu.memory_space<semaphore_mem>>
    tpu.enqueue_dma source(%arg6 : memref<512x512xbf16, #tpu.memory_space<any>>) target(%arg17 : memref<512x512xbf16, #tpu.memory_space<vmem>>) target_semaphore(%3 : memref<!tpu.dma_semaphore, #tpu.memory_space<semaphore_mem>>)
    %c0 = arith.constant 0 : index
    %c0_0 = arith.constant 0 : index
    %4 = vector.load %arg1[%c0, %c0_0] : memref<8x16xf32, #tpu.memory_space<vmem>>, vector<8x16xf32>
    %5 = arith.truncf %4 : vector<8x16xf32> to vector<8x16xbf16>
    %c0_1 = arith.constant 0 : index
    %c0_2 = arith.constant 0 : index
    %6 = vector.load %arg3[%c0_1, %c0_2] : memref<16x512xbf16, #tpu.memory_space<vmem>>, vector<16x512xbf16>
    %cst = arith.constant dense<0.000000e+00> : vector<8x512xf32>
    %7 = tpu.matmul %5, %6, %cst {dimension_numbers = #tpu.dot_dimension_numbers<[1], [0], [0], [1], [0, 0, 1, 1], [], []>} : vector<8x16xbf16>, vector<16x512xbf16>, vector<8x512xf32> -> vector<8x512xf32>
    %c0_3 = arith.constant 0 : index
    %c0_4 = arith.constant 0 : index
    %8 = vector.load %arg2[%c0_3, %c0_4] : memref<8x1xf32, #tpu.memory_space<vmem>>, vector<8x1xf32>
    %c0_5 = arith.constant 0 : index
    %c0_6 = arith.constant 0 : index
    %9 = vector.load %arg4[%c0_5, %c0_6] : memref<1x512xf32, #tpu.memory_space<vmem>>, vector<1x512xf32>
    %10 = vector.broadcast %8 : vector<8x1xf32> to vector<8x512xf32>
    %11 = vector.broadcast %9 : vector<1x512xf32> to vector<8x512xf32>
    %12 = arith.mulf %10, %11 : vector<8x512xf32>
    %13 = arith.addf %7, %12 : vector<8x512xf32>
    %cst_7 = arith.constant dense<0.000000e+00> : vector<512xf32>
    %14 = vector.multi_reduction <add>, %13, %cst_7 [0] : vector<8x512xf32> to vector<512xf32>
    %15 = vector.shape_cast %14 : vector<512xf32> to vector<1x512xf32>
    %cst_8 = arith.constant 8.000000e+00 : f32
    %16 = vector.broadcast %cst_8 : f32 to vector<1x512xf32>
    %17 = arith.divf %15, %16 : vector<1x512xf32>
    %18 = vector.broadcast %17 : vector<1x512xf32> to vector<8x512xf32>
    %19 = arith.subf %13, %18 : vector<8x512xf32>
    %20 = arith.mulf %19, %19 : vector<8x512xf32>
    %cst_9 = arith.constant dense<0.000000e+00> : vector<512xf32>
    %21 = vector.multi_reduction <add>, %20, %cst_9 [0] : vector<8x512xf32> to vector<512xf32>
    %22 = vector.shape_cast %21 : vector<512xf32> to vector<1x512xf32>
    %cst_10 = arith.constant 8.000000e+00 : f32
    %23 = vector.broadcast %cst_10 : f32 to vector<1x512xf32>
    %24 = arith.divf %22, %23 : vector<1x512xf32>
    %cst_11 = arith.constant 9.99999974E-6 : f32
    %25 = vector.broadcast %cst_11 : f32 to vector<1x512xf32>
    %26 = arith.addf %24, %25 : vector<1x512xf32>
    %27 = math.rsqrt %26 : vector<1x512xf32>
    %28 = vector.broadcast %27 : vector<1x512xf32> to vector<8x512xf32>
    %29 = arith.mulf %19, %28 : vector<8x512xf32>
    %c0_12 = arith.constant 0 : index
    %c0_13 = arith.constant 0 : index
    %30 = vector.load %arg7[%c0_12, %c0_13] : memref<1x512xf32, #tpu.memory_space<vmem>>, vector<1x512xf32>
    %31 = vector.broadcast %30 : vector<1x512xf32> to vector<8x512xf32>
    %32 = arith.mulf %29, %31 : vector<8x512xf32>
    %c0_14 = arith.constant 0 : index
    %c0_15 = arith.constant 0 : index
    %33 = vector.load %arg8[%c0_14, %c0_15] : memref<1x512xf32, #tpu.memory_space<vmem>>, vector<1x512xf32>
    %34 = vector.broadcast %33 : vector<1x512xf32> to vector<8x512xf32>
    %35 = arith.addf %32, %34 : vector<8x512xf32>
    %cst_16 = arith.constant 0.00999999977 : f32
    %36 = vector.broadcast %cst_16 : f32 to vector<8x512xf32>
    %37 = arith.mulf %36, %35 : vector<8x512xf32>
    %38 = arith.maximumf %35, %37 : vector<8x512xf32>
    %c0_i32_17 = arith.constant 0 : i32
    %39 = tpu.memref_slice %arg18[%c0_i32_17] : memref<2x!tpu.dma_semaphore, #tpu.memory_space<semaphore_mem>> -> memref<1x!tpu.dma_semaphore, #tpu.memory_space<semaphore_mem>>
    %40 = tpu.memref_squeeze %39 : memref<1x!tpu.dma_semaphore, #tpu.memory_space<semaphore_mem>> -> memref<!tpu.dma_semaphore, #tpu.memory_space<semaphore_mem>>
    tpu.wait_dma2 semaphore(%40 : memref<!tpu.dma_semaphore, #tpu.memory_space<semaphore_mem>>) src(%arg5 : memref<512x512xbf16, #tpu.memory_space<any>>) dst(%arg16 : memref<512x512xbf16, #tpu.memory_space<vmem>>)
    %41 = arith.truncf %38 : vector<8x512xf32> to vector<8x512xbf16>
    %c0_18 = arith.constant 0 : index
    %c0_19 = arith.constant 0 : index
    %42 = vector.load %arg16[%c0_18, %c0_19] : memref<512x512xbf16, #tpu.memory_space<vmem>>, vector<512x512xbf16>
    %cst_20 = arith.constant dense<0.000000e+00> : vector<8x512xf32>
    %43 = tpu.matmul %41, %42, %cst_20 {dimension_numbers = #tpu.dot_dimension_numbers<[1], [0], [0], [1], [0, 0, 1, 1], [], []>} : vector<8x512xbf16>, vector<512x512xbf16>, vector<8x512xf32> -> vector<8x512xf32>
    %cst_21 = arith.constant dense<0.000000e+00> : vector<512xf32>
    %44 = vector.multi_reduction <add>, %43, %cst_21 [0] : vector<8x512xf32> to vector<512xf32>
    %45 = vector.shape_cast %44 : vector<512xf32> to vector<1x512xf32>
    %cst_22 = arith.constant 8.000000e+00 : f32
    %46 = vector.broadcast %cst_22 : f32 to vector<1x512xf32>
    %47 = arith.divf %45, %46 : vector<1x512xf32>
    %48 = vector.broadcast %47 : vector<1x512xf32> to vector<8x512xf32>
    %49 = arith.subf %43, %48 : vector<8x512xf32>
    %50 = arith.mulf %49, %49 : vector<8x512xf32>
    %cst_23 = arith.constant dense<0.000000e+00> : vector<512xf32>
    %51 = vector.multi_reduction <add>, %50, %cst_23 [0] : vector<8x512xf32> to vector<512xf32>
    %52 = vector.shape_cast %51 : vector<512xf32> to vector<1x512xf32>
    %cst_24 = arith.constant 8.000000e+00 : f32
    %53 = vector.broadcast %cst_24 : f32 to vector<1x512xf32>
    %54 = arith.divf %52, %53 : vector<1x512xf32>
    %cst_25 = arith.constant 9.99999974E-6 : f32
    %55 = vector.broadcast %cst_25 : f32 to vector<1x512xf32>
    %56 = arith.addf %54, %55 : vector<1x512xf32>
    %57 = math.rsqrt %56 : vector<1x512xf32>
    %58 = vector.broadcast %57 : vector<1x512xf32> to vector<8x512xf32>
    %59 = arith.mulf %49, %58 : vector<8x512xf32>
    %c0_26 = arith.constant 0 : index
    %c0_27 = arith.constant 0 : index
    %60 = vector.load %arg9[%c0_26, %c0_27] : memref<1x512xf32, #tpu.memory_space<vmem>>, vector<1x512xf32>
    %61 = vector.broadcast %60 : vector<1x512xf32> to vector<8x512xf32>
    %62 = arith.mulf %59, %61 : vector<8x512xf32>
    %c0_28 = arith.constant 0 : index
    %c0_29 = arith.constant 0 : index
    %63 = vector.load %arg10[%c0_28, %c0_29] : memref<1x512xf32, #tpu.memory_space<vmem>>, vector<1x512xf32>
    %64 = vector.broadcast %63 : vector<1x512xf32> to vector<8x512xf32>
    %65 = arith.addf %62, %64 : vector<8x512xf32>
    %cst_30 = arith.constant 0.00999999977 : f32
    %66 = vector.broadcast %cst_30 : f32 to vector<8x512xf32>
    %67 = arith.mulf %66, %65 : vector<8x512xf32>
    %68 = arith.maximumf %65, %67 : vector<8x512xf32>
    %c1_i32_31 = arith.constant 1 : i32
    %69 = tpu.memref_slice %arg18[%c1_i32_31] : memref<2x!tpu.dma_semaphore, #tpu.memory_space<semaphore_mem>> -> memref<1x!tpu.dma_semaphore, #tpu.memory_space<semaphore_mem>>
    %70 = tpu.memref_squeeze %69 : memref<1x!tpu.dma_semaphore, #tpu.memory_space<semaphore_mem>> -> memref<!tpu.dma_semaphore, #tpu.memory_space<semaphore_mem>>
    tpu.wait_dma2 semaphore(%70 : memref<!tpu.dma_semaphore, #tpu.memory_space<semaphore_mem>>) src(%arg6 : memref<512x512xbf16, #tpu.memory_space<any>>) dst(%arg17 : memref<512x512xbf16, #tpu.memory_space<vmem>>)
    %71 = arith.truncf %68 : vector<8x512xf32> to vector<8x512xbf16>
    %c0_32 = arith.constant 0 : index
    %c0_33 = arith.constant 0 : index
    %72 = vector.load %arg17[%c0_32, %c0_33] : memref<512x512xbf16, #tpu.memory_space<vmem>>, vector<512x512xbf16>
    %cst_34 = arith.constant dense<0.000000e+00> : vector<8x512xf32>
    %73 = tpu.matmul %71, %72, %cst_34 {dimension_numbers = #tpu.dot_dimension_numbers<[1], [0], [0], [1], [0, 0, 1, 1], [], []>} : vector<8x512xbf16>, vector<512x512xbf16>, vector<8x512xf32> -> vector<8x512xf32>
    %cst_35 = arith.constant dense<0.000000e+00> : vector<512xf32>
    %74 = vector.multi_reduction <add>, %73, %cst_35 [0] : vector<8x512xf32> to vector<512xf32>
    %75 = vector.shape_cast %74 : vector<512xf32> to vector<1x512xf32>
    %cst_36 = arith.constant 8.000000e+00 : f32
    %76 = vector.broadcast %cst_36 : f32 to vector<1x512xf32>
    %77 = arith.divf %75, %76 : vector<1x512xf32>
    %78 = vector.broadcast %77 : vector<1x512xf32> to vector<8x512xf32>
    %79 = arith.subf %73, %78 : vector<8x512xf32>
    %80 = arith.mulf %79, %79 : vector<8x512xf32>
    %cst_37 = arith.constant dense<0.000000e+00> : vector<512xf32>
    %81 = vector.multi_reduction <add>, %80, %cst_37 [0] : vector<8x512xf32> to vector<512xf32>
    %82 = vector.shape_cast %81 : vector<512xf32> to vector<1x512xf32>
    %cst_38 = arith.constant 8.000000e+00 : f32
    %83 = vector.broadcast %cst_38 : f32 to vector<1x512xf32>
    %84 = arith.divf %82, %83 : vector<1x512xf32>
    %cst_39 = arith.constant 9.99999974E-6 : f32
    %85 = vector.broadcast %cst_39 : f32 to vector<1x512xf32>
    %86 = arith.addf %84, %85 : vector<1x512xf32>
    %87 = math.rsqrt %86 : vector<1x512xf32>
    %88 = vector.broadcast %87 : vector<1x512xf32> to vector<8x512xf32>
    %89 = arith.mulf %79, %88 : vector<8x512xf32>
    %c0_40 = arith.constant 0 : index
    %c0_41 = arith.constant 0 : index
    %90 = vector.load %arg11[%c0_40, %c0_41] : memref<1x512xf32, #tpu.memory_space<vmem>>, vector<1x512xf32>
    %91 = vector.broadcast %90 : vector<1x512xf32> to vector<8x512xf32>
    %92 = arith.mulf %89, %91 : vector<8x512xf32>
    %c0_42 = arith.constant 0 : index
    %c0_43 = arith.constant 0 : index
    %93 = vector.load %arg12[%c0_42, %c0_43] : memref<1x512xf32, #tpu.memory_space<vmem>>, vector<1x512xf32>
    %94 = vector.broadcast %93 : vector<1x512xf32> to vector<8x512xf32>
    %95 = arith.addf %92, %94 : vector<8x512xf32>
    %cst_44 = arith.constant 0.00999999977 : f32
    %96 = vector.broadcast %cst_44 : f32 to vector<8x512xf32>
    %97 = arith.mulf %96, %95 : vector<8x512xf32>
    %98 = arith.maximumf %95, %97 : vector<8x512xf32>
    %c0_45 = arith.constant 0 : index
    %c0_46 = arith.constant 0 : index
    %99 = vector.load %arg13[%c0_45, %c0_46] : memref<1x512xf32, #tpu.memory_space<vmem>>, vector<1x512xf32>
    %100 = vector.broadcast %99 : vector<1x512xf32> to vector<8x512xf32>
    %101 = arith.mulf %98, %100 : vector<8x512xf32>
    %cst_47 = arith.constant dense<0.000000e+00> : vector<8xf32>
    %102 = vector.multi_reduction <add>, %101, %cst_47 [1] : vector<8x512xf32> to vector<8xf32>
    %103 = vector.shape_cast %102 : vector<8xf32> to vector<8x1xf32>
    %c0_48 = arith.constant 0 : index
    %c0_49 = arith.constant 0 : index
    %104 = vector.load %arg14[%c0_48, %c0_49] : memref<1x1xf32, #tpu.memory_space<vmem>>, vector<1x1xf32>
    %105 = vector.broadcast %104 : vector<1x1xf32> to vector<8x1xf32>
    %106 = arith.addf %103, %105 : vector<8x1xf32>
    %cst_50 = arith.constant 5.000000e-01 : f32
    %107 = vector.broadcast %cst_50 : f32 to vector<8x1xf32>
    %108 = arith.mulf %107, %106 : vector<8x1xf32>
    %109 = math.tanh %108 : vector<8x1xf32>
    %cst_51 = arith.constant 1.000000e+00 : f32
    %110 = vector.broadcast %cst_51 : f32 to vector<8x1xf32>
    %111 = arith.addf %109, %110 : vector<8x1xf32>
    %cst_52 = arith.constant 5.000000e-01 : f32
    %112 = vector.broadcast %cst_52 : f32 to vector<8x1xf32>
    %113 = arith.mulf %112, %111 : vector<8x1xf32>
    %c0_53 = arith.constant 0 : index
    %c0_54 = arith.constant 0 : index
    %114 = vector.load %arg15[%c0_53, %c0_54] : memref<8x1xf32, #tpu.memory_space<vmem>>, vector<8x1xf32>
    tpu.vector_store %arg15[%c0_53, %c0_54], %113 {strides = array<i32>} : memref<8x1xf32, #tpu.memory_space<vmem>>, vector<8x1xf32>,
    return
  }
  func.func @transform_0(%arg0: i32) -> (i32, i32) {
    %c0_i32 = arith.constant 0 : i32
    %c0_i32_0 = arith.constant 0 : i32
    %c0_i32_1 = arith.constant 0 : i32
    return %c0_i32, %c0_i32_0 : i32, i32
  }
  func.func @transform_1(%arg0: i32) -> (i32, i32) {
    %c0_i32 = arith.constant 0 : i32
    %c0_i32_0 = arith.constant 0 : i32
    %c0_i32_1 = arith.constant 0 : i32
    return %c0_i32, %c0_i32_0 : i32, i32
  }
  func.func @transform_2(%arg0: i32) -> (i32, i32) {
    %c0_i32 = arith.constant 0 : i32
    %c0_i32_0 = arith.constant 0 : i32
    %c0_i32_1 = arith.constant 0 : i32
    return %c0_i32, %c0_i32_0 : i32, i32
  }
  func.func @transform_3(%arg0: i32) -> (i32, i32) {
    %c0_i32 = arith.constant 0 : i32
    %c0_i32_0 = arith.constant 0 : i32
    %c0_i32_1 = arith.constant 0 : i32
    return %c0_i32, %c0_i32_0 : i32, i32
  }
  func.func @transform_6(%arg0: i32) -> (i32, i32) {
    %c0_i32 = arith.constant 0 : i32
    %c0_i32_0 = arith.constant 0 : i32
    %c0_i32_1 = arith.constant 0 : i32
    return %c0_i32, %c0_i32_0 : i32, i32
  }
  func.func @transform_7(%arg0: i32) -> (i32, i32) {
    %c0_i32 = arith.constant 0 : i32
    %c0_i32_0 = arith.constant 0 : i32
    %c0_i32_1 = arith.constant 0 : i32
    return %c0_i32, %c0_i32_0 : i32, i32
  }
  func.func @transform_8(%arg0: i32) -> (i32, i32) {
    %c0_i32 = arith.constant 0 : i32
    %c0_i32_0 = arith.constant 0 : i32
    %c0_i32_1 = arith.constant 0 : i32
    return %c0_i32, %c0_i32_0 : i32, i32
  }
  func.func @transform_9(%arg0: i32) -> (i32, i32) {
    %c0_i32 = arith.constant 0 : i32
    %c0_i32_0 = arith.constant 0 : i32
    %c0_i32_1 = arith.constant 0 : i32
    return %c0_i32, %c0_i32_0 : i32, i32
  }
  func.func @transform_10(%arg0: i32) -> (i32, i32) {
    %c0_i32 = arith.constant 0 : i32
    %c0_i32_0 = arith.constant 0 : i32
    %c0_i32_1 = arith.constant 0 : i32
    return %c0_i32, %c0_i32_0 : i32, i32
  }
  func.func @transform_11(%arg0: i32) -> (i32, i32) {
    %c0_i32 = arith.constant 0 : i32
    %c0_i32_0 = arith.constant 0 : i32
    %c0_i32_1 = arith.constant 0 : i32
    return %c0_i32, %c0_i32_0 : i32, i32
  }
  func.func @transform_12(%arg0: i32) -> (i32, i32) {
    %c0_i32 = arith.constant 0 : i32
    %c0_i32_0 = arith.constant 0 : i32
    %c0_i32_1 = arith.constant 0 : i32
    return %c0_i32, %c0_i32_0 : i32, i32
  }
  func.func @transform_13(%arg0: i32) -> (i32, i32) {
    %c0_i32 = arith.constant 0 : i32
    %c0_i32_0 = arith.constant 0 : i32
    %c0_i32_1 = arith.constant 0 : i32
    return %c0_i32, %c0_i32_0 : i32, i32
  }
  func.func @transform_14(%arg0: i32) -> (i32, i32) {
    %c0_i32 = arith.constant 0 : i32
    %c0_i32_0 = arith.constant 0 : i32
    %c0_i32_1 = arith.constant 0 : i32
    return %c0_i32, %c0_i32_0 : i32, i32
  }
}

</mosaic_0001>

<bundles_post_ra>
// kernel: dn_dis_forward.1
= control target key start
LH: loop header
LB: loop body
LE: loop exit
PB: predicated region body
PF: predicated region fallthrough
CT: control target
= control target key end

     0   :  { %s3784_s0 = inlined_call_operand.vmem [shape: f32[8,16], index: 0, kind: input, shape index: {}]   ;;  %s3785_s1 = inlined_call_operand.vmem [shape: f32[8,1], index: 1, kind: input, shape index: {}]   ;;  %s3786_s2 = inlined_call_operand.vmem [shape: bf16[16,512], index: 2, kind: input, shape index: {}]   ;;  %s3787_s3 = inlined_call_operand.hbm [shape: f32[1,512], index: 3, kind: input, shape index: {}]   ;;  %s3788_s4 = inlined_call_operand.hbm [shape: bf16[512,512], index: 4, kind: input, shape index: {}]   ;;  %s3789_s5 = inlined_call_operand.hbm [shape: bf16[512,512], index: 5, kind: input, shape index: {}]   ;;  %s3790_s6 = inlined_call_operand.hbm [shape: f32[1,512], index: 6, kind: input, shape index: {}]   ;;  %s3791_s7 = inlined_call_operand.hbm [shape: f32[1,512], index: 7, kind: input, shape index: {}]   ;;  %s3792_s8 = inlined_call_operand.hbm [shape: f32[1,512], index: 8, kind: input, shape index: {}]   ;;  %s3793_s9 = inlined_call_operand.hbm [shape: f32[1,512], index: 9, kind: input, shape index: {}]   ;;  %s3794_s10 = inlined_call_operand.hbm [shape: f32[1,512], index: 10, kind: input, shape index: {}]   ;;  %s3795_s11 = inlined_call_operand.hbm [shape: f32[1,512], index: 11, kind: input, shape index: {}]   ;;  %s3796_s12 = inlined_call_operand.vmem [shape: f32[1,512], index: 12, kind: input, shape index: {}]   ;;  %s3797_s13 = inlined_call_operand.<no memory space> [shape: f32[1,1], index: 13, kind: input, shape index: {}]   ;;  %s3798_s14 = inlined_call_operand.vmem [shape: f32[8,1], index: 14, kind: output, shape index: {}]  }
   0x1   :  { %v19_v0 = vstv %s3797_s13 }
   0x2   :  { %20 = vst [vmem:[#allocation5] sm:$0x1] %v19_v0 }
   0x3   :  { %21 = vsyncpa [#allocation7], 0 }
   0x4   :  { %22 = vsyncpa [#allocation9], 0 }
   0x5   :  { %23 = vsyncpa [#allocation12], 0 }
   0x6   :  { %24 = vsyncpa [#allocation15], 0  ;;  %s3531_s15 = smov [#allocation8]   ;;  %s3532_s17 = smov [#allocation11]  }
   0x7   :  { %s47_s16 = sshll.u32 %s3531_s15, 4  ;;  %s67_s18 = sshll.u32 %s3532_s17, 4  ;;  %s48_s16 = int_to_ptr.vmem [resolvable:$true] %s47_s16  ;;  %s68_s18 = int_to_ptr.vmem [resolvable:$true] %s67_s18 }
   0x8   :  { %s3347_s19 = scalar_lea.vmem %s48_s16, 64  ;;  %p3352_p1 = scmp.lt.s32.totalorder %s48_s16, %s48_s16 }
   0x9   :  { %p3348_p0 = scmp.ne.s32.totalorder %s48_s16, %s3347_s19  ;;  %p3353_p2 = scmp.lt.s32.totalorder %s3347_s19, %s3347_s19 }
   0xb   :  { %p3354_p3 = por %p3353_p2, %p3352_p1 }
   0xd   :  { %p3355_p4 = pnand %p3354_p3, %p3348_p0 }
   0xf   :  { %3358 = shalt.err (!%p3355_p4)
}
  0x10   :  { %50 = dma.hbm_to_vmem [thread:$0]  %s3790_s6, 64, %s48_s16, [#allocation9]  }
  0x11   :  { %s3367_s21 = scalar_lea.vmem %s68_s18, 64  ;;  %p3372_p6 = scmp.lt.s32.totalorder %s68_s18, %s68_s18 }
  0x12   :  { %p3368_p5 = scmp.ne.s32.totalorder %s68_s18, %s3367_s21  ;;  %p3373_p7 = scmp.lt.s32.totalorder %s3367_s21, %s3367_s21 }
  0x14   :  { %p3374_p8 = por %p3373_p7, %p3372_p6 }
  0x16   :  { %p3375_p9 = pnand %p3374_p8, %p3368_p5 }
  0x18   :  { %3378 = shalt.err (!%p3375_p9)
}
  0x19   :  { %70 = dma.hbm_to_vmem [thread:$0]  %s3792_s8, 64, %s68_s18, [#allocation12]  }
  0x1a   :  { %s3533_s24 = smov [#allocation14]   ;;  %s3534_s26 = smov [#allocation6]  }
  0x1b   :  { %s87_s25 = sshll.u32 %s3533_s24, 4  ;;  %s37_s27 = sshll.u32 %s3534_s26, 4  ;;  %s88_s25 = int_to_ptr.vmem [resolvable:$true] %s87_s25  ;;  %s38_s27 = int_to_ptr.vmem [resolvable:$true] %s37_s27 }
  0x1c   :  { %s3387_s28 = scalar_lea.vmem %s88_s25, 64  ;;  %p3392_p11 = scmp.lt.s32.totalorder %s88_s25, %s88_s25 }
  0x1d   :  { %p3388_p10 = scmp.ne.s32.totalorder %s88_s25, %s3387_s28  ;;  %p3393_p12 = scmp.lt.s32.totalorder %s3387_s28, %s3387_s28 }
  0x1f   :  { %p3394_p13 = por %p3393_p12, %p3392_p11 }
  0x21   :  { %p3395_p0 = pnand %p3394_p13, %p3388_p10 }
  0x23   :  { %3398 = shalt.err (!%p3395_p0)
}
  0x24   :  { %90 = dma.hbm_to_vmem [thread:$0]  %s3794_s10, 64, %s88_s25, [#allocation15]  }
  0x25   :  { %s3407_s30 = scalar_lea.vmem %s38_s27, 64  ;;  %p3412_p2 = scmp.lt.s32.totalorder %s38_s27, %s38_s27 }
  0x26   :  { %p3408_p1 = scmp.ne.s32.totalorder %s38_s27, %s3407_s30  ;;  %p3413_p3 = scmp.lt.s32.totalorder %s3407_s30, %s3407_s30 }
  0x28   :  { %p3414_p4 = por %p3413_p3, %p3412_p2 }
  0x2a   :  { %p3415_p5 = pnand %p3414_p4, %p3408_p1 }
  0x2c   :  { %3418 = shalt.err (!%p3415_p5)
}
  0x2d   :  { %40 = dma.hbm_to_vmem [thread:$0]  %s3787_s3, 64, %s38_s27, [#allocation7]  }
  0x2e   :  { %s3535_s16 = smov [#allocation10]   ;;  %s3536_s18 = smov [#allocation13]  }
  0x2f   :  { %s57_s17 = sshll.u32 %s3535_s16, 4  ;;  %s77_s19 = sshll.u32 %s3536_s18, 4  ;;  %s58_s17 = int_to_ptr.vmem [resolvable:$true] %s57_s17  ;;  %s78_s19 = int_to_ptr.vmem [resolvable:$true] %s77_s19 }
  0x30   :  { %s3427_s20 = scalar_lea.vmem %s58_s17, 64  ;;  %p3432_p7 = scmp.lt.s32.totalorder %s58_s17, %s58_s17 }
  0x31   :  { %p3428_p6 = scmp.ne.s32.totalorder %s58_s17, %s3427_s20  ;;  %p3433_p8 = scmp.lt.s32.totalorder %s3427_s20, %s3427_s20 }
  0x33   :  { %p3434_p9 = por %p3433_p8, %p3432_p7 }
  0x35   :  { %p3435_p10 = pnand %p3434_p9, %p3428_p6 }
  0x37   :  { %3438 = shalt.err (!%p3435_p10)
}
  0x38   :  { %60 = dma.hbm_to_vmem [thread:$0]  %s3791_s7, 64, %s58_s17, [#allocation9]  }
  0x39   :  { %s3447_s21 = scalar_lea.vmem %s78_s19, 64  ;;  %p3452_p12 = scmp.lt.s32.totalorder %s78_s19, %s78_s19 }
  0x3a   :  { %p3448_p11 = scmp.ne.s32.totalorder %s78_s19, %s3447_s21  ;;  %p3453_p13 = scmp.lt.s32.totalorder %s3447_s21, %s3447_s21 }
  0x3c   :  { %p3454_p0 = por %p3453_p13, %p3452_p12 }
  0x3e   :  { %p3455_p1 = pnand %p3454_p0, %p3448_p11 }
  0x40   :  { %3458 = shalt.err (!%p3455_p1)
}
  0x41   :  { %80 = dma.hbm_to_vmem [thread:$0]  %s3793_s9, 64, %s78_s19, [#allocation12]  }
  0x42   :  { %s3537_s23 = smov [#allocation16]  }
  0x43   :  { %s97_s24 = sshll.u32 %s3537_s23, 4  ;;  %s98_s24 = int_to_ptr.vmem [resolvable:$true] %s97_s24 }
  0x44   :  { %s3467_s25 = scalar_lea.vmem %s98_s24, 64  ;;  %p3472_p3 = scmp.lt.s32.totalorder %s98_s24, %s98_s24 }
  0x45   :  { %p3468_p2 = scmp.ne.s32.totalorder %s98_s24, %s3467_s25  ;;  %p3473_p4 = scmp.lt.s32.totalorder %s3467_s25, %s3467_s25 }
  0x47   :  { %p3474_p5 = por %p3473_p4, %p3472_p3 }
  0x49   :  { %p3475_p6 = pnand %p3474_p5, %p3468_p2 }
  0x4b   :  { %3478 = shalt.err (!%p3475_p6)
}
  0x4c   :  { %100 = dma.hbm_to_vmem [thread:$0]  %s3795_s11, 64, %s98_s24, [#allocation15]  }
  0x4d   :  { %3519 = dma.done.wait [#allocation7], 64  }
  0x4e   :  { %3520 = vsyncadd [#allocation7], 4294967232 }
  0x4f   :  { %3521 = dma.done.wait [#allocation9], 128  }
  0x50   :  { %3522 = vsyncadd [#allocation9], 4294967168 }
  0x51   :  { %3523 = dma.done.wait [#allocation12], 128  }
  0x52   :  { %3524 = vsyncadd [#allocation12], 4294967168 }
  0x53   :  { %3525 = dma.done.wait [#allocation15], 128  }
  0x54   :  { %3526 = vsyncadd [#allocation15], 4294967168  ;;  %v3538_v1 = vmov 0   ;;  %v2923_v2 = vld [vmem:[%s3786_s2 + $0x4] ss:$16 sps:$4 sm:$0xff]   ;;  %vm208_vm0 = vcmask 130048  }
  0x55   :  { %244 = vmatprep.mubr.bf16.mxu0 %v3538_v1  ;;  %285 = vmatprep.mubr.bf16.mxu1 %v3538_v1  ;;  %v2925_v3 = vld [vmem:[%s3786_s2 + $0xc] ss:$16 sps:$4 sm:$0xff]   ;;  %v2927_v4 = vld [vmem:[%s3786_s2] ss:$16 sps:$4 sm:$0xff]   ;;  %v2928_v5 = vld [vmem:[%s3786_s2 + $0x8] ss:$16 sps:$4 sm:$0xff]  }
  0x56   :  { %2922 = vset.pattern.permute.xlu0 %v3538_v1  ;;  %226 = vmatprep.subr.bf16.mxu0 %v2923_v2  ;;  %v150_v6 = vld [vmem:[%s3784_s0] sm:$0xff]  ;;  %s3539_s19 = smov [#allocation2]   ;;  %s3540_s2 = smov [#allocation3]  }
  0x57   :  { %267 = vmatprep.subr.bf16.mxu1 %v2925_v3  ;;  %v151_v7 = vpack.c.bf16 %v150_v6, %v150_v6  ;;  %v156_v8 = vld [vmem:[%s3785_s1] sm:$0xff]  ;;  %227 = vmatpush1.bf16.msra.mxu0 %v2927_v4  ;;  %s134_s20 = sshll.u32 %s3539_s19, 4  ;;  %s146_s10 = sshll.u32 %s3540_s2, 4  ;;  %s135_s20 = int_to_ptr.vmem [resolvable:$true] %s134_s20  ;;  %s147_s10 = int_to_ptr.vmem [resolvable:$true] %s146_s10 }
  0x58   :  { %268 = vmatpush1.bf16.msra.mxu1 %v2928_v5  ;;  %160 = vperm.xlu0 %2922, %v156_v8   ;;  %s3487_s13 = scalar_lea.vmem %s135_s20, 16384  ;;  %p3492_p8 = scmp.lt.s32.totalorder %s135_s20, %s135_s20 }
  0x59   :  { %p3488_p7 = scmp.ne.s32.totalorder %s135_s20, %s3487_s13  ;;  %p3493_p9 = scmp.lt.s32.totalorder %s3487_s13, %s3487_s13 }
  0x5a   :  { %2651 = vmatmul.mubr.msk.bf16.vlgmr.msra.gmra.mxu0 %vm208_vm0, %v151_v7 }
  0x5b   :  { %2652 = vmatmul.mubr.msk.bf16.vlgmr.msra.gmra.mxu1 %vm208_vm0, %v151_v7  ;;  %p3494_p10 = por %p3493_p9, %p3492_p8 }
  0x5d   :  { %p3495_p11 = pnand %p3494_p10, %p3488_p7 }
  0x5f   :  { %3498 = shalt.err (!%p3495_p11)  }
  0x60   :  { %137 = dma.hbm_to_vmem [thread:$0]  %s3788_s4, 16384, %s135_s20, [#allocation4] }
  0x61   :  { %s3507_s21 = scalar_lea.vmem %s147_s10, 16384  ;;  %p3512_p13 = scmp.lt.s32.totalorder %s147_s10, %s147_s10 }
  0x62   :  { %p3508_p12 = scmp.ne.s32.totalorder %s147_s10, %s3507_s21  ;;  %p3513_p0 = scmp.lt.s32.totalorder %s3507_s21, %s3507_s21 }
  0x64   :  { %p3514_p1 = por %p3513_p0, %p3512_p13 }
  0x66   :  { %p3515_p2 = pnand %p3514_p1, %p3508_p12 }
  0x68   :  { %3518 = shalt.err (!%p3515_p2)  }
  0x69   :  { %149 = dma.hbm_to_vmem [thread:$0]  %s3789_s5, 16384, %s147_s10, [#allocation4 + $0x1]  ;;  %v164_v9 = vlaneseq  ;;  %v157_v13 = vld [vmem:[#allocation6] sm:$0xf] }
  0x6b   :  { %v165_v10 = vshrl.u32 %v164_v9, 7 }
  0x6d   :  { %v3664_v11 = vsub.s32 0, %v165_v10  ;;  %v3666_v12 = vsub.s32 2, %v165_v10  ;;  %v3668_v14 = vsub.s32 1, %v165_v10  ;;  %v3670_v15 = vsub.s32 3, %v165_v10 }
  0x6f   :  { %v167_v16 = vrot.slane %v157_v13, %v3664_v11  ;;  %v175_v17 = vrot.slane %v157_v13, %v3666_v12  ;;  %v171_v19 = vrot.slane %v157_v13, %v3668_v14  ;;  %v179_v20 = vrot.slane %v157_v13, %v3670_v15 }
  0xd3   :  { %v161_v18 = vpop.permute.xlu0 %160 }
  0xd4   :  { %v184_v21 = vmul.f32 %v167_v16, %v161_v18  ;;  %v186_v22 = vmul.f32 %v175_v17, %v161_v18  ;;  %v185_v23 = vmul.f32 %v171_v19, %v161_v18  ;;  %v187_v24 = vmul.f32 %v179_v20, %v161_v18 }
 0x11a   :  { %v246_v25 = vpop.f32.mrf.mxu0 }
 0x11b   :  { %v287_v26 = vpop.f32.mrf.mxu1  ;;  %v247_v27 = vadd.f32 %v246_v25, %v184_v21 }
 0x11c   :  { %v288_v28 = vadd.f32 %v287_v26, %v186_v22  ;;  %v248_v29 = vpop.f32.mrf.mxu0 }
 0x11d   :  { %v289_v30 = vpop.f32.mrf.mxu1  ;;  %v294_v31 = vrot.slane %v247_v27, 4  ;;  %v249_v33 = vadd.f32 %v248_v29, %v185_v23 }
 0x11e   :  { %v306_v32 = vrot.slane %v288_v28, 4  ;;  %v290_v34 = vadd.f32 %v289_v30, %v187_v24  ;;  %v250_v35 = vpop.f32.mrf.mxu0 }
 0x11f   :  { %v291_v36 = vpop.f32.mrf.mxu1  ;;  %v295_v37 = vadd.f32 %v294_v31, %v247_v27  ;;  %v300_v39 = vrot.slane %v249_v33, 4 }
 0x120   :  { %v307_v38 = vadd.f32 %v306_v32, %v288_v28  ;;  %v312_v40 = vrot.slane %v290_v34, 4  ;;  %v251_v41 = vpop.f32.mrf.mxu0 }
 0x121   :  { %v292_v42 = vpop.f32.mrf.mxu1  ;;  %v296_v43 = vrot.slane %v295_v37, 2  ;;  %v301_v45 = vadd.f32 %v300_v39, %v249_v33 }
 0x122   :  { %v308_v44 = vrot.slane %v307_v38, 2  ;;  %v313_v46 = vadd.f32 %v312_v40, %v290_v34 }
 0x123   :  { %v297_v47 = vadd.f32 %v296_v43, %v295_v37  ;;  %v302_v49 = vrot.slane %v301_v45, 2 }
 0x124   :  { %v309_v48 = vadd.f32 %v308_v44, %v307_v38  ;;  %v314_v50 = vrot.slane %v313_v46, 2 }
 0x125   :  { %v298_v51 = vrot.slane %v297_v47, 1  ;;  %v303_v53 = vadd.f32 %v302_v49, %v301_v45  ;;  %v371_v45 = vld [vmem:[#allocation8] sm:$0xf] }
 0x126   :  { %v310_v52 = vrot.slane %v309_v48, 1  ;;  %v315_v54 = vadd.f32 %v314_v50, %v313_v46  ;;  %v397_v46 = vld [vmem:[#allocation10] sm:$0xf]  ;;  %v384_v49 = vrot.slane %v371_v45, %v3666_v12 }
 0x127   :  { %v299_v55 = vadd.f32 %v298_v51, %v297_v47  ;;  %v304_v57 = vrot.slane %v303_v53, 1  ;;  %v376_v47 = vrot.slane %v371_v45, %v3664_v11 }
 0x128   :  { %v311_v56 = vadd.f32 %v310_v52, %v309_v48  ;;  %v316_v58 = vrot.slane %v315_v54, 1  ;;  %v402_v52 = vrot.slane %v397_v46, %v3664_v11 }
 0x129   :  { %v319_v59 = vmul.f32 0.125, %v299_v55  ;;  %v305_v61 = vadd.f32 %v304_v57, %v303_v53  ;;  %v380_v53 = vrot.slane %v371_v45, %v3668_v14  ;;  %v388_v57 = vrot.slane %v371_v45, %v3670_v15 }
 0x12a   :  { %v321_v60 = vmul.f32 0.125, %v311_v56  ;;  %v317_v62 = vadd.f32 %v316_v58, %v315_v54  ;;  %v410_v56 = vrot.slane %v397_v46, %v3666_v12 }
 0x12b   :  { %v323_v63 = vsub.f32 %v247_v27, %v319_v59  ;;  %v320_v1 = vmul.f32 0.125, %v305_v61  ;;  %v406_v61 = vrot.slane %v397_v46, %v3668_v14 }
 0x12c   :  { %v325_v0 = vsub.f32 %v288_v28, %v321_v60  ;;  %v322_v2 = vmul.f32 0.125, %v317_v62 }
 0x12d   :  { %v327_v3 = vmul.f32 %v323_v63, %v323_v63  ;;  %v324_v5 = vsub.f32 %v249_v33, %v320_v1 }
 0x12e   :  { %v329_v4 = vmul.f32 %v325_v0, %v325_v0  ;;  %v326_v6 = vsub.f32 %v290_v34, %v322_v2  ;;  %v414_v2 = vrot.slane %v397_v46, %v3670_v15 }
 0x12f   :  { %v331_v7 = vrot.slane %v327_v3, 4  ;;  %v328_v9 = vmul.f32 %v324_v5, %v324_v5 }
 0x130   :  { %v343_v8 = vrot.slane %v329_v4, 4  ;;  %v330_v10 = vmul.f32 %v326_v6, %v326_v6 }
 0x131   :  { %v332_v13 = vadd.f32 %v331_v7, %v327_v3  ;;  %v337_v17 = vrot.slane %v328_v9, 4 }
 0x132   :  { %v344_v16 = vadd.f32 %v343_v8, %v329_v4  ;;  %v349_v18 = vrot.slane %v330_v10, 4 }
 0x133   :  { %v333_v19 = vrot.slane %v332_v13, 2  ;;  %v338_v21 = vadd.f32 %v337_v17, %v328_v9 }
 0x134   :  { %v345_v20 = vrot.slane %v344_v16, 2  ;;  %v350_v22 = vadd.f32 %v349_v18, %v330_v10 }
 0x135   :  { %v334_v23 = vadd.f32 %v333_v19, %v332_v13  ;;  %v339_v25 = vrot.slane %v338_v21, 2 }
 0x136   :  { %v346_v24 = vadd.f32 %v345_v20, %v344_v16  ;;  %v351_v26 = vrot.slane %v350_v22, 2 }
 0x137   :  { %v335_v27 = vrot.slane %v334_v23, 1  ;;  %v340_v29 = vadd.f32 %v339_v25, %v338_v21 }
 0x138   :  { %v347_v28 = vrot.slane %v346_v24, 1  ;;  %v352_v30 = vadd.f32 %v351_v26, %v350_v22 }
 0x139   :  { %v336_v31 = vadd.f32 %v335_v27, %v334_v23  ;;  %v341_v33 = vrot.slane %v340_v29, 1 }
 0x13a   :  { %v348_v32 = vadd.f32 %v347_v28, %v346_v24  ;;  %v353_v34 = vrot.slane %v352_v30, 1 }
 0x13b   :  { %v355_v35 = vmul.f32 0.125, %v336_v31  ;;  %v342_v37 = vadd.f32 %v341_v33, %v340_v29 }
 0x13c   :  { %v357_v36 = vmul.f32 0.125, %v348_v32  ;;  %v354_v38 = vadd.f32 %v353_v34, %v352_v30 }
 0x13d   :  { %v359_v39 = vadd.f32 1e-05, %v355_v35  ;;  %v356_v41 = vmul.f32 0.125, %v342_v37 }
 0x13e   :  { %v361_v40 = vadd.f32 1e-05, %v357_v36  ;;  %v358_v42 = vmul.f32 0.125, %v354_v38 }
 0x13f   :  { %2929 = vrsqrt.f32 %v359_v39  ;;  %v360_v43 = vadd.f32 1e-05, %v356_v41 }
 0x140   :  { %v362_v44 = vadd.f32 1e-05, %v358_v42  ;;  %2931 = vrsqrt.f32 %v361_v40 }
 0x141   :  { %2933 = vrsqrt.f32 %v360_v43 }
 0x142   :  { %2935 = vrsqrt.f32 %v362_v44 }
 0x14c   :  { %v2930_v48 = vpop.eup %2929 }
 0x14d   :  { %v2932_v50 = vpop.eup %2931  ;;  %v367_v51 = vmul.f32 %v2930_v48, %v323_v63 }
 0x14e   :  { %v2934_v54 = vpop.eup %2933  ;;  %v369_v55 = vmul.f32 %v2932_v50, %v325_v0 }
 0x14f   :  { %v2936_v58 = vpop.eup %2935  ;;  %v393_v59 = vmul.f32 %v376_v47, %v367_v51  ;;  %v368_v60 = vmul.f32 %v2934_v54, %v324_v5 }
 0x150   :  { %v395_v62 = vmul.f32 %v384_v49, %v369_v55  ;;  %v370_v1 = vmul.f32 %v2936_v58, %v326_v6 }
 0x151   :  { %v419_v63 = vadd.f32 %v402_v52, %v393_v59  ;;  %v394_v3 = vmul.f32 %v380_v53, %v368_v60 }
 0x152   :  { %v421_v4 = vadd.f32 %v410_v56, %v395_v62  ;;  %v396_v7 = vmul.f32 %v388_v57, %v370_v1 }
 0x153   :  { %v423_v8 = vmul.f32 0.01, %v419_v63  ;;  %v420_v9 = vadd.f32 %v406_v61, %v394_v3 }
 0x154   :  { %v425_v0 = vmul.f32 0.01, %v421_v4  ;;  %v422_v10 = vadd.f32 %v414_v2, %v396_v7 }
 0x155   :  { %v3684_v13 = vmax.f32 %v419_v63, %v423_v8  ;;  %v424_v16 = vmul.f32 0.01, %v420_v9 }
 0x156   :  { %v3686_v17 = vmax.f32 %v421_v4, %v425_v0  ;;  %v426_v5 = vmul.f32 0.01, %v422_v10 }
 0x157   :  { %v428_v18 = vmax.f32 %v420_v9, %v424_v16 }
 0x158   :  { %v430_v19 = vmax.f32 %v422_v10, %v426_v5 }
 0x159   :  { %3527 = dma.done.wait [#allocation4], 16384 }
 0x15a   :  { %3528 = vsyncadd [#allocation4], 4294950912  ;;  %v3688_v6 = vpack.c.bf16 %v428_v18, %v428_v18  ;;  %v3690_v20 = vpack.c.bf16 %v430_v19, %v430_v19  ;;  %v2937_v21 = vld [vmem:[#allocation2 + $0xe4] ss:$16 sps:$4 sm:$0xff]   ;;  %v2941_v23 = vld [vmem:[#allocation2 + $0xe0] ss:$16 sps:$4 sm:$0xff]  }
 0x15b   :  { %v2939_v22 = vld [vmem:[#allocation2 + $0x2e4] ss:$16 sps:$4 sm:$0xff]   ;;  %1207 = vmatprep.subr.bf16.mxu0 %v2937_v21  ;;  %v2942_v24 = vld [vmem:[#allocation2 + $0x2e0] ss:$16 sps:$4 sm:$0xff]  }
 0x15c   :  { %1239 = vmatprep.mubr.bf16.mxu0 %v3688_v6  ;;  %1280 = vmatprep.mubr.bf16.mxu1 %v3690_v20  ;;  %v2943_v25 = vld [vmem:[#allocation2 + $0xc4] ss:$16 sps:$4 sm:$0xff]   ;;  %v2947_v27 = vld [vmem:[#allocation2 + $0xc0] ss:$16 sps:$4 sm:$0xff]  }
 0x15d   :  { %1248 = vmatprep.subr.bf16.mxu1 %v2939_v22  ;;  %1208 = vmatpush1.bf16.msra.mxu0 %v2941_v23  ;;  %v2945_v26 = vld [vmem:[#allocation2 + $0x2c4] ss:$16 sps:$4 sm:$0xff]   ;;  %v2948_v28 = vld [vmem:[#allocation2 + $0x2c0] ss:$16 sps:$4 sm:$0xff]  }
 0x15e   :  { %1249 = vmatpush1.bf16.msra.mxu1 %v2942_v24  ;;  %1209 = vmatprep.subr.bf16.mxu0 %v2943_v25  ;;  %v2949_v29 = vld [vmem:[#allocation2 + $0xa4] ss:$16 sps:$4 sm:$0xff]   ;;  %v2953_v31 = vld [vmem:[#allocation2 + $0xa0] ss:$16 sps:$4 sm:$0xff]  }
 0x15f   :  { %1250 = vmatprep.subr.bf16.mxu1 %v2945_v26  ;;  %v2951_v30 = vld [vmem:[#allocation2 + $0x2a4] ss:$16 sps:$4 sm:$0xff]   ;;  %v2954_v32 = vld [vmem:[#allocation2 + $0x2a0] ss:$16 sps:$4 sm:$0xff]  }
 0x160   :  { %v2955_v33 = vld [vmem:[#allocation2 + $0x84] ss:$16 sps:$4 sm:$0xff]   ;;  %v2959_v35 = vld [vmem:[#allocation2 + $0x80] ss:$16 sps:$4 sm:$0xff]  }
 0x161   :  { %1210 = vmatpush1.bf16.msra.mxu0 %v2947_v27  ;;  %v2957_v34 = vld [vmem:[#allocation2 + $0x284] ss:$16 sps:$4 sm:$0xff]   ;;  %v2960_v36 = vld [vmem:[#allocation2 + $0x280] ss:$16 sps:$4 sm:$0xff]  }
 0x162   :  { %1251 = vmatpush1.bf16.msra.mxu1 %v2948_v28  ;;  %1211 = vmatprep.subr.bf16.mxu0 %v2949_v29  ;;  %v2961_v37 = vld [vmem:[#allocation2 + $0x64] ss:$16 sps:$4 sm:$0xff]   ;;  %v2965_v39 = vld [vmem:[#allocation2 + $0x60] ss:$16 sps:$4 sm:$0xff]   ;;  %v3035_v29 = vld [vmem:[#allocation2 + $0xec] ss:$16 sps:$4 sm:$0xff]  }
 0x163   :  { %1252 = vmatprep.subr.bf16.mxu1 %v2951_v30  ;;  %v2963_v38 = vld [vmem:[#allocation2 + $0x264] ss:$16 sps:$4 sm:$0xff]   ;;  %v2966_v40 = vld [vmem:[#allocation2 + $0x260] ss:$16 sps:$4 sm:$0xff]   ;;  %v3038_v30 = vld [vmem:[#allocation2 + $0x2ec] ss:$16 sps:$4 sm:$0xff]  }
 0x164   :  { %v2967_v41 = vld [vmem:[#allocation2 + $0x44] ss:$16 sps:$4 sm:$0xff]   ;;  %v2971_v43 = vld [vmem:[#allocation2 + $0x40] ss:$16 sps:$4 sm:$0xff]  }
 0x165   :  { %1212 = vmatpush1.bf16.msra.mxu0 %v2953_v31  ;;  %v2969_v42 = vld [vmem:[#allocation2 + $0x244] ss:$16 sps:$4 sm:$0xff]   ;;  %v2972_v44 = vld [vmem:[#allocation2 + $0x240] ss:$16 sps:$4 sm:$0xff]   ;;  %v3696_v31 = vpack.c.bf16 %v3684_v13, %v3684_v13  ;;  %v3047_v13 = vld [vmem:[#allocation2 + $0xac] ss:$16 sps:$4 sm:$0xff]  }
 0x166   :  { %1253 = vmatpush1.bf16.msra.mxu1 %v2954_v32  ;;  %1213 = vmatprep.subr.bf16.mxu0 %v2955_v33  ;;  %v2973_v45 = vld [vmem:[#allocation2 + $0x24] ss:$16 sps:$4 sm:$0xff]   ;;  %v2977_v47 = vld [vmem:[#allocation2 + $0x20] ss:$16 sps:$4 sm:$0xff]   ;;  %v3700_v32 = vpack.c.bf16 %v3686_v17, %v3686_v17  ;;  %v3033_v33 = vld [vmem:[#allocation2 + $0xe8] ss:$16 sps:$4 sm:$0xff]  }
 0x167   :  { %1254 = vmatprep.subr.bf16.mxu1 %v2957_v34  ;;  %v2975_v46 = vld [vmem:[#allocation2 + $0x224] ss:$16 sps:$4 sm:$0xff]   ;;  %v2978_v48 = vld [vmem:[#allocation2 + $0x220] ss:$16 sps:$4 sm:$0xff]   ;;  %v3036_v34 = vld [vmem:[#allocation2 + $0x2e8] ss:$16 sps:$4 sm:$0xff]  }
 0x168   :  { %v2979_v49 = vld [vmem:[#allocation2 + $0x4] ss:$16 sps:$4 sm:$0xff]   ;;  %v2983_v51 = vld [vmem:[#allocation2] ss:$16 sps:$4 sm:$0xff]   ;;  %v3050_v17 = vld [vmem:[#allocation2 + $0x2ac] ss:$16 sps:$4 sm:$0xff]  }
 0x169   :  { %1214 = vmatpush1.bf16.msra.mxu0 %v2959_v35  ;;  %v2981_v50 = vld [vmem:[#allocation2 + $0x204] ss:$16 sps:$4 sm:$0xff]   ;;  %v2984_v52 = vld [vmem:[#allocation2 + $0x200] ss:$16 sps:$4 sm:$0xff]   ;;  %v3041_v35 = vld [vmem:[#allocation2 + $0xcc] ss:$16 sps:$4 sm:$0xff]  }
 0x16a   :  { %1255 = vmatpush1.bf16.msra.mxu1 %v2960_v36  ;;  %1215 = vmatprep.subr.bf16.mxu0 %v2961_v37  ;;  %v2985_v53 = vld [vmem:[#allocation2 + $0x1e4] ss:$16 sps:$4 sm:$0xff]   ;;  %v2989_v55 = vld [vmem:[#allocation2 + $0x1e0] ss:$16 sps:$4 sm:$0xff]   ;;  %v3044_v36 = vld [vmem:[#allocation2 + $0x2cc] ss:$16 sps:$4 sm:$0xff]  }
 0x16b   :  { %1256 = vmatprep.subr.bf16.mxu1 %v2963_v38  ;;  %v2987_v54 = vld [vmem:[#allocation2 + $0x3e4] ss:$16 sps:$4 sm:$0xff]   ;;  %v2990_v56 = vld [vmem:[#allocation2 + $0x3e0] ss:$16 sps:$4 sm:$0xff]   ;;  %v3039_v37 = vld [vmem:[#allocation2 + $0xc8] ss:$16 sps:$4 sm:$0xff]  }
 0x16c   :  { %v2991_v57 = vld [vmem:[#allocation2 + $0x1c4] ss:$16 sps:$4 sm:$0xff]   ;;  %v2995_v59 = vld [vmem:[#allocation2 + $0x1c0] ss:$16 sps:$4 sm:$0xff]   ;;  %v3042_v38 = vld [vmem:[#allocation2 + $0x2c8] ss:$16 sps:$4 sm:$0xff]  }
 0x16d   :  { %1216 = vmatpush1.bf16.msra.mxu0 %v2965_v39  ;;  %v2993_v58 = vld [vmem:[#allocation2 + $0x3c4] ss:$16 sps:$4 sm:$0xff]   ;;  %v2996_v60 = vld [vmem:[#allocation2 + $0x3c0] ss:$16 sps:$4 sm:$0xff]   ;;  %v3045_v39 = vld [vmem:[#allocation2 + $0xa8] ss:$16 sps:$4 sm:$0xff]  }
 0x16e   :  { %1257 = vmatpush1.bf16.msra.mxu1 %v2966_v40  ;;  %1217 = vmatprep.subr.bf16.mxu0 %v2967_v41  ;;  %v2997_v61 = vld [vmem:[#allocation2 + $0x1a4] ss:$16 sps:$4 sm:$0xff]   ;;  %v3001_v1 = vld [vmem:[#allocation2 + $0x1a0] ss:$16 sps:$4 sm:$0xff]   ;;  %v3048_v40 = vld [vmem:[#allocation2 + $0x2a8] ss:$16 sps:$4 sm:$0xff]  }
 0x16f   :  { %1258 = vmatprep.subr.bf16.mxu1 %v2969_v42  ;;  %v2999_v62 = vld [vmem:[#allocation2 + $0x3a4] ss:$16 sps:$4 sm:$0xff]   ;;  %v3002_v2 = vld [vmem:[#allocation2 + $0x3a0] ss:$16 sps:$4 sm:$0xff]   ;;  %v3053_v41 = vld [vmem:[#allocation2 + $0x8c] ss:$16 sps:$4 sm:$0xff]  }
 0x170   :  { %v3003_v63 = vld [vmem:[#allocation2 + $0x184] ss:$16 sps:$4 sm:$0xff]   ;;  %v3007_v4 = vld [vmem:[#allocation2 + $0x180] ss:$16 sps:$4 sm:$0xff]   ;;  %v3056_v42 = vld [vmem:[#allocation2 + $0x28c] ss:$16 sps:$4 sm:$0xff]  }
 0x171   :  { %1218 = vmatpush1.bf16.msra.mxu0 %v2971_v43  ;;  %v3005_v3 = vld [vmem:[#allocation2 + $0x384] ss:$16 sps:$4 sm:$0xff]   ;;  %v3008_v7 = vld [vmem:[#allocation2 + $0x380] ss:$16 sps:$4 sm:$0xff]   ;;  %v3051_v43 = vld [vmem:[#allocation2 + $0x88] ss:$16 sps:$4 sm:$0xff]  }
 0x172   :  { %1259 = vmatpush1.bf16.msra.mxu1 %v2972_v44  ;;  %1219 = vmatprep.subr.bf16.mxu0 %v2973_v45  ;;  %v3009_v8 = vld [vmem:[#allocation2 + $0x164] ss:$16 sps:$4 sm:$0xff]   ;;  %v3013_v0 = vld [vmem:[#allocation2 + $0x160] ss:$16 sps:$4 sm:$0xff]   ;;  %v3054_v44 = vld [vmem:[#allocation2 + $0x288] ss:$16 sps:$4 sm:$0xff]  }
 0x173   :  { %1260 = vmatprep.subr.bf16.mxu1 %v2975_v46  ;;  %v3011_v9 = vld [vmem:[#allocation2 + $0x364] ss:$16 sps:$4 sm:$0xff]   ;;  %v3014_v10 = vld [vmem:[#allocation2 + $0x360] ss:$16 sps:$4 sm:$0xff]   ;;  %v3059_v45 = vld [vmem:[#allocation2 + $0x6c] ss:$16 sps:$4 sm:$0xff]  }
 0x174   :  { %v3015_v16 = vld [vmem:[#allocation2 + $0x144] ss:$16 sps:$4 sm:$0xff]   ;;  %v3019_v18 = vld [vmem:[#allocation2 + $0x140] ss:$16 sps:$4 sm:$0xff]   ;;  %v3062_v46 = vld [vmem:[#allocation2 + $0x26c] ss:$16 sps:$4 sm:$0xff]  }
 0x175   :  { %1220 = vmatpush1.bf16.msra.mxu0 %v2977_v47  ;;  %v3017_v5 = vld [vmem:[#allocation2 + $0x344] ss:$16 sps:$4 sm:$0xff]   ;;  %v3020_v19 = vld [vmem:[#allocation2 + $0x340] ss:$16 sps:$4 sm:$0xff]   ;;  %v3057_v47 = vld [vmem:[#allocation2 + $0x68] ss:$16 sps:$4 sm:$0xff]  }
 0x176   :  { %1261 = vmatpush1.bf16.msra.mxu1 %v2978_v48  ;;  %1221 = vmatprep.subr.bf16.mxu0 %v2979_v49  ;;  %v3021_v21 = vld [vmem:[#allocation2 + $0x124] ss:$16 sps:$4 sm:$0xff]   ;;  %v3025_v23 = vld [vmem:[#allocation2 + $0x120] ss:$16 sps:$4 sm:$0xff]   ;;  %v3068_v48 = vld [vmem:[#allocation2 + $0x24c] ss:$16 sps:$4 sm:$0xff]  }
 0x177   :  { %1262 = vmatprep.subr.bf16.mxu1 %v2981_v50  ;;  %v3023_v22 = vld [vmem:[#allocation2 + $0x324] ss:$16 sps:$4 sm:$0xff]   ;;  %v3026_v24 = vld [vmem:[#allocation2 + $0x320] ss:$16 sps:$4 sm:$0xff]   ;;  %v3063_v49 = vld [vmem:[#allocation2 + $0x48] ss:$16 sps:$4 sm:$0xff]  }
 0x178   :  { %v3027_v25 = vld [vmem:[#allocation2 + $0x104] ss:$16 sps:$4 sm:$0xff]   ;;  %v3031_v27 = vld [vmem:[#allocation2 + $0x100] ss:$16 sps:$4 sm:$0xff]   ;;  %v3066_v50 = vld [vmem:[#allocation2 + $0x248] ss:$16 sps:$4 sm:$0xff]  }
 0x179   :  { %1222 = vmatpush1.bf16.msra.mxu0 %v2983_v51  ;;  %v3029_v26 = vld [vmem:[#allocation2 + $0x304] ss:$16 sps:$4 sm:$0xff]   ;;  %v3032_v28 = vld [vmem:[#allocation2 + $0x300] ss:$16 sps:$4 sm:$0xff]   ;;  %v3071_v51 = vld [vmem:[#allocation2 + $0x2c] ss:$16 sps:$4 sm:$0xff]  }
 0x17a   :  { %1263 = vmatpush1.bf16.msra.mxu1 %v2984_v52  ;;  %1223 = vmatprep.subr.bf16.mxu0 %v2985_v53  ;;  %v3074_v52 = vld [vmem:[#allocation2 + $0x22c] ss:$16 sps:$4 sm:$0xff]   ;;  %v3069_v53 = vld [vmem:[#allocation2 + $0x28] ss:$16 sps:$4 sm:$0xff]  }
 0x17b   :  { %1264 = vmatprep.subr.bf16.mxu1 %v2987_v54  ;;  %v3072_v54 = vld [vmem:[#allocation2 + $0x228] ss:$16 sps:$4 sm:$0xff]  }
 0x17d   :  { %1224 = vmatpush2.bf16.msra.mxu0 %v2989_v55  ;;  %v3077_v55 = vld [vmem:[#allocation2 + $0xc] ss:$16 sps:$4 sm:$0xff]  }
 0x17e   :  { %1265 = vmatpush2.bf16.msra.mxu1 %v2990_v56  ;;  %1225 = vmatprep.subr.bf16.mxu0 %v2991_v57  ;;  %v3080_v56 = vld [vmem:[#allocation2 + $0x20c] ss:$16 sps:$4 sm:$0xff]   ;;  %v3075_v57 = vld [vmem:[#allocation2 + $0x8] ss:$16 sps:$4 sm:$0xff]  }
 0x17f   :  { %1266 = vmatprep.subr.bf16.mxu1 %v2993_v58  ;;  %v3078_v58 = vld [vmem:[#allocation2 + $0x208] ss:$16 sps:$4 sm:$0xff]  }
 0x181   :  { %1226 = vmatpush2.bf16.msra.mxu0 %v2995_v59  ;;  %v3083_v59 = vld [vmem:[#allocation2 + $0x1ec] ss:$16 sps:$4 sm:$0xff]  }
 0x182   :  { %1267 = vmatpush2.bf16.msra.mxu1 %v2996_v60  ;;  %1227 = vmatprep.subr.bf16.mxu0 %v2997_v61  ;;  %v3086_v60 = vld [vmem:[#allocation2 + $0x3ec] ss:$16 sps:$4 sm:$0xff]   ;;  %v3081_v61 = vld [vmem:[#allocation2 + $0x1e8] ss:$16 sps:$4 sm:$0xff]  }
 0x183   :  { %1268 = vmatprep.subr.bf16.mxu1 %v2999_v62  ;;  %v3084_v62 = vld [vmem:[#allocation2 + $0x3e8] ss:$16 sps:$4 sm:$0xff]  }
 0x185   :  { %1228 = vmatpush2.bf16.msra.mxu0 %v3001_v1  ;;  %v3089_v1 = vld [vmem:[#allocation2 + $0x1cc] ss:$16 sps:$4 sm:$0xff]  }
 0x186   :  { %1269 = vmatpush2.bf16.msra.mxu1 %v3002_v2  ;;  %1229 = vmatprep.subr.bf16.mxu0 %v3003_v63  ;;  %v3092_v2 = vld [vmem:[#allocation2 + $0x3cc] ss:$16 sps:$4 sm:$0xff]   ;;  %v3087_v63 = vld [vmem:[#allocation2 + $0x1c8] ss:$16 sps:$4 sm:$0xff]  }
 0x187   :  { %1270 = vmatprep.subr.bf16.mxu1 %v3005_v3  ;;  %v3090_v3 = vld [vmem:[#allocation2 + $0x3c8] ss:$16 sps:$4 sm:$0xff]  }
 0x189   :  { %1230 = vmatpush2.bf16.msra.mxu0 %v3007_v4  ;;  %v3095_v4 = vld [vmem:[#allocation2 + $0x1ac] ss:$16 sps:$4 sm:$0xff]  }
 0x18a   :  { %1271 = vmatpush2.bf16.msra.mxu1 %v3008_v7  ;;  %1231 = vmatprep.subr.bf16.mxu0 %v3009_v8  ;;  %v3098_v7 = vld [vmem:[#allocation2 + $0x3ac] ss:$16 sps:$4 sm:$0xff]   ;;  %v3093_v8 = vld [vmem:[#allocation2 + $0x1a8] ss:$16 sps:$4 sm:$0xff]  }
 0x18b   :  { %1272 = vmatprep.subr.bf16.mxu1 %v3011_v9  ;;  %v3096_v9 = vld [vmem:[#allocation2 + $0x3a8] ss:$16 sps:$4 sm:$0xff]  }
 0x18d   :  { %1232 = vmatpush2.bf16.msra.mxu0 %v3013_v0  ;;  %v3101_v0 = vld [vmem:[#allocation2 + $0x18c] ss:$16 sps:$4 sm:$0xff]  }
 0x18e   :  { %1273 = vmatpush2.bf16.msra.mxu1 %v3014_v10  ;;  %1233 = vmatprep.subr.bf16.mxu0 %v3015_v16  ;;  %v3104_v10 = vld [vmem:[#allocation2 + $0x38c] ss:$16 sps:$4 sm:$0xff]   ;;  %v3099_v16 = vld [vmem:[#allocation2 + $0x188] ss:$16 sps:$4 sm:$0xff]  }
 0x18f   :  { %1274 = vmatprep.subr.bf16.mxu1 %v3017_v5  ;;  %v3102_v5 = vld [vmem:[#allocation2 + $0x388] ss:$16 sps:$4 sm:$0xff]  }
 0x191   :  { %1234 = vmatpush2.bf16.msra.mxu0 %v3019_v18  ;;  %v3107_v18 = vld [vmem:[#allocation2 + $0x16c] ss:$16 sps:$4 sm:$0xff]  }
 0x192   :  { %1275 = vmatpush2.bf16.msra.mxu1 %v3020_v19  ;;  %1235 = vmatprep.subr.bf16.mxu0 %v3021_v21  ;;  %v3110_v19 = vld [vmem:[#allocation2 + $0x36c] ss:$16 sps:$4 sm:$0xff]   ;;  %v3105_v21 = vld [vmem:[#allocation2 + $0x168] ss:$16 sps:$4 sm:$0xff]  }
 0x193   :  { %1276 = vmatprep.subr.bf16.mxu1 %v3023_v22  ;;  %v3108_v22 = vld [vmem:[#allocation2 + $0x368] ss:$16 sps:$4 sm:$0xff]  }
 0x195   :  { %1236 = vmatpush2.bf16.msra.mxu0 %v3025_v23  ;;  %v3113_v23 = vld [vmem:[#allocation2 + $0x14c] ss:$16 sps:$4 sm:$0xff]  }
 0x196   :  { %1277 = vmatpush2.bf16.msra.mxu1 %v3026_v24  ;;  %1237 = vmatprep.subr.bf16.mxu0 %v3027_v25  ;;  %v3116_v24 = vld [vmem:[#allocation2 + $0x34c] ss:$16 sps:$4 sm:$0xff]   ;;  %v3111_v25 = vld [vmem:[#allocation2 + $0x148] ss:$16 sps:$4 sm:$0xff]  }
 0x197   :  { %1278 = vmatprep.subr.bf16.mxu1 %v3029_v26  ;;  %v3114_v26 = vld [vmem:[#allocation2 + $0x348] ss:$16 sps:$4 sm:$0xff]  }
 0x199   :  { %1238 = vmatpush2.bf16.msra.mxu0 %v3031_v27  ;;  %v3119_v27 = vld [vmem:[#allocation2 + $0x12c] ss:$16 sps:$4 sm:$0xff]  }
 0x19a   :  { %1279 = vmatpush2.bf16.msra.mxu1 %v3032_v28  ;;  %1289 = vmatprep.subr.bf16.mxu0 %v3035_v29  ;;  %v3122_v28 = vld [vmem:[#allocation2 + $0x32c] ss:$16 sps:$4 sm:$0xff]   ;;  %v3117_v29 = vld [vmem:[#allocation2 + $0x128] ss:$16 sps:$4 sm:$0xff]  }
 0x19b   :  { %1330 = vmatprep.subr.bf16.mxu1 %v3038_v30  ;;  %v3120_v30 = vld [vmem:[#allocation2 + $0x328] ss:$16 sps:$4 sm:$0xff]  }
 0x19c   :  { %1240 = vmatmul.mubr.bf16.vlgmr.msra.gmra.mxu0 %v3696_v31 }
 0x19d   :  { %1281 = vmatmul.mubr.bf16.vlgmr.msra.gmra.mxu1 %v3700_v32  ;;  %1290 = vmatpush1.bf16.msra.mxu0 %v3033_v33  ;;  %v3125_v33 = vld [vmem:[#allocation2 + $0x10c] ss:$16 sps:$4 sm:$0xff]  }
 0x19e   :  { %1331 = vmatpush1.bf16.msra.mxu1 %v3036_v34  ;;  %1291 = vmatprep.subr.bf16.mxu0 %v3041_v35  ;;  %v3128_v34 = vld [vmem:[#allocation2 + $0x30c] ss:$16 sps:$4 sm:$0xff]   ;;  %v3123_v35 = vld [vmem:[#allocation2 + $0x108] ss:$16 sps:$4 sm:$0xff]  }
 0x19f   :  { %1332 = vmatprep.subr.bf16.mxu1 %v3044_v36  ;;  %1321 = vmatprep.mubr.bf16.mxu0 %v3688_v6  ;;  %v3060_v6 = vld [vmem:[#allocation2 + $0x268] ss:$16 sps:$4 sm:$0xff]  }
 0x1a0   :  { %1362 = vmatprep.mubr.bf16.mxu1 %v3690_v20  ;;  %v3065_v20 = vld [vmem:[#allocation2 + $0x4c] ss:$16 sps:$4 sm:$0xff]   ;;  %v3126_v36 = vld [vmem:[#allocation2 + $0x308] ss:$16 sps:$4 sm:$0xff]  }
 0x1a1   :  { %1292 = vmatpush1.bf16.msra.mxu0 %v3039_v37 }
 0x1a2   :  { %1333 = vmatpush1.bf16.msra.mxu1 %v3042_v38  ;;  %1293 = vmatprep.subr.bf16.mxu0 %v3047_v13 }
 0x1a3   :  { %1334 = vmatprep.subr.bf16.mxu1 %v3050_v17 }
 0x1a5   :  { %1294 = vmatpush1.bf16.msra.mxu0 %v3045_v39 }
 0x1a6   :  { %1335 = vmatpush1.bf16.msra.mxu1 %v3048_v40  ;;  %1295 = vmatprep.subr.bf16.mxu0 %v3053_v41 }
 0x1a7   :  { %1336 = vmatprep.subr.bf16.mxu1 %v3056_v42 }
 0x1a9   :  { %1296 = vmatpush1.bf16.msra.mxu0 %v3051_v43 }
 0x1aa   :  { %1337 = vmatpush1.bf16.msra.mxu1 %v3054_v44  ;;  %1297 = vmatprep.subr.bf16.mxu0 %v3059_v45 }
 0x1ab   :  { %1338 = vmatprep.subr.bf16.mxu1 %v3062_v46 }
 0x1ad   :  { %1298 = vmatpush1.bf16.msra.mxu0 %v3057_v47 }
 0x1ae   :  { %1339 = vmatpush1.bf16.msra.mxu1 %v3060_v6  ;;  %1299 = vmatprep.subr.bf16.mxu0 %v3065_v20 }
 0x1af   :  { %1340 = vmatprep.subr.bf16.mxu1 %v3068_v48 }
 0x1b1   :  { %1300 = vmatpush1.bf16.msra.mxu0 %v3063_v49 }
 0x1b2   :  { %1341 = vmatpush1.bf16.msra.mxu1 %v3066_v50  ;;  %1301 = vmatprep.subr.bf16.mxu0 %v3071_v51 }
 0x1b3   :  { %1342 = vmatprep.subr.bf16.mxu1 %v3074_v52 }
 0x1b5   :  { %1302 = vmatpush1.bf16.msra.mxu0 %v3069_v53 }
 0x1b6   :  { %1343 = vmatpush1.bf16.msra.mxu1 %v3072_v54  ;;  %1303 = vmatprep.subr.bf16.mxu0 %v3077_v55 }
 0x1b7   :  { %1344 = vmatprep.subr.bf16.mxu1 %v3080_v56 }
 0x1b9   :  { %1304 = vmatpush1.bf16.msra.mxu0 %v3075_v57 }
 0x1ba   :  { %1345 = vmatpush1.bf16.msra.mxu1 %v3078_v58  ;;  %1305 = vmatprep.subr.bf16.mxu0 %v3083_v59 }
 0x1bb   :  { %1346 = vmatprep.subr.bf16.mxu1 %v3086_v60 }
 0x1bd   :  { %1306 = vmatpush2.bf16.msra.mxu0 %v3081_v61 }
 0x1be   :  { %1347 = vmatpush2.bf16.msra.mxu1 %v3084_v62  ;;  %1307 = vmatprep.subr.bf16.mxu0 %v3089_v1 }
 0x1bf   :  { %1348 = vmatprep.subr.bf16.mxu1 %v3092_v2 }
 0x1c1   :  { %1308 = vmatpush2.bf16.msra.mxu0 %v3087_v63 }
 0x1c2   :  { %1349 = vmatpush2.bf16.msra.mxu1 %v3090_v3  ;;  %1309 = vmatprep.subr.bf16.mxu0 %v3095_v4 }
 0x1c3   :  { %1350 = vmatprep.subr.bf16.mxu1 %v3098_v7 }
 0x1c5   :  { %1310 = vmatpush2.bf16.msra.mxu0 %v3093_v8 }
 0x1c6   :  { %1351 = vmatpush2.bf16.msra.mxu1 %v3096_v9  ;;  %1311 = vmatprep.subr.bf16.mxu0 %v3101_v0 }
 0x1c7   :  { %1352 = vmatprep.subr.bf16.mxu1 %v3104_v10 }
 0x1c9   :  { %1312 = vmatpush2.bf16.msra.mxu0 %v3099_v16 }
 0x1ca   :  { %1353 = vmatpush2.bf16.msra.mxu1 %v3102_v5  ;;  %1313 = vmatprep.subr.bf16.mxu0 %v3107_v18  ;;  %v3708_v18 = vld [vmem:[#allocation11] sm:$0xf] }
 0x1cb   :  { %1354 = vmatprep.subr.bf16.mxu1 %v3110_v19  ;;  %v3710_v19 = vld [vmem:[#allocation13] sm:$0xf] }
 0x1cd   :  { %1314 = vmatpush2.bf16.msra.mxu0 %v3105_v21  ;;  %v1452_v21 = vrot.slane %v3708_v18, %v3664_v11 }
 0x1ce   :  { %1355 = vmatpush2.bf16.msra.mxu1 %v3108_v22  ;;  %1315 = vmatprep.subr.bf16.mxu0 %v3113_v23 }
 0x1cf   :  { %1356 = vmatprep.subr.bf16.mxu1 %v3116_v24  ;;  %v1478_v24 = vrot.slane %v3710_v19, %v3664_v11 }
 0x1d1   :  { %1316 = vmatpush2.bf16.msra.mxu0 %v3111_v25  ;;  %v1456_v25 = vrot.slane %v3708_v18, %v3668_v14 }
 0x1d2   :  { %1357 = vmatpush2.bf16.msra.mxu1 %v3114_v26  ;;  %1317 = vmatprep.subr.bf16.mxu0 %v3119_v27 }
 0x1d3   :  { %1358 = vmatprep.subr.bf16.mxu1 %v3122_v28 }
 0x1d5   :  { %1318 = vmatpush2.bf16.msra.mxu0 %v3117_v29  ;;  %v1482_v29 = vrot.slane %v3710_v19, %v3668_v14 }
 0x1d6   :  { %1359 = vmatpush2.bf16.msra.mxu1 %v3120_v30  ;;  %1319 = vmatprep.subr.bf16.mxu0 %v3125_v33 }
 0x1d7   :  { %1360 = vmatprep.subr.bf16.mxu1 %v3128_v34 }
 0x1d9   :  { %1320 = vmatpush2.bf16.msra.mxu0 %v3123_v35 }
 0x1da   :  { %1361 = vmatpush2.bf16.msra.mxu1 %v3126_v36 }
 0x1dc   :  { %1322 = vmatmul.mubr.bf16.vlgmr.msra.gmra.mxu0 %v3696_v31 }
 0x1dd   :  { %1363 = vmatmul.mubr.bf16.vlgmr.msra.gmra.mxu1 %v3700_v32 }
 0x25c   :  { %v1241_v37 = vpop.f32.mrf.mxu0 }
 0x25d   :  { %v1282_v38 = vpop.f32.mrf.mxu1 }
 0x25e   :  { %v1283_v13 = vadd.f32 %v1282_v38, %v1241_v37  ;;  %v1243_v17 = vpop.f32.mrf.mxu0 }
 0x25f   :  { %v1284_v39 = vpop.f32.mrf.mxu1 }
 0x260   :  { %v1371_v40 = vrot.slane %v1283_v13, 4  ;;  %v1285_v41 = vadd.f32 %v1284_v39, %v1243_v17  ;;  %v1245_v42 = vpop.f32.mrf.mxu0 }
 0x261   :  { %v1286_v43 = vpop.f32.mrf.mxu1 }
 0x262   :  { %v1372_v44 = vadd.f32 %v1371_v40, %v1283_v13  ;;  %v1377_v45 = vrot.slane %v1285_v41, 4  ;;  %v1246_v46 = vpop.f32.mrf.mxu0 }
 0x263   :  { %v1287_v47 = vpop.f32.mrf.mxu1 }
 0x264   :  { %v1373_v6 = vrot.slane %v1372_v44, 2  ;;  %v1378_v20 = vadd.f32 %v1377_v45, %v1285_v41 }
 0x266   :  { %v1374_v48 = vadd.f32 %v1373_v6, %v1372_v44  ;;  %v1379_v49 = vrot.slane %v1378_v20, 2 }
 0x268   :  { %v1375_v31 = vrot.slane %v1374_v48, 1  ;;  %v1380_v50 = vadd.f32 %v1379_v49, %v1378_v20 }
 0x26a   :  { %v1376_v32 = vadd.f32 %v1375_v31, %v1374_v48  ;;  %v1381_v51 = vrot.slane %v1380_v50, 1 }
 0x26c   :  { %v1395_v52 = vmul.f32 0.125, %v1376_v32  ;;  %v1382_v53 = vadd.f32 %v1381_v51, %v1380_v50 }
 0x26e   :  { %v1399_v54 = vsub.f32 %v1283_v13, %v1395_v52  ;;  %v1396_v55 = vmul.f32 0.125, %v1382_v53 }
 0x270   :  { %v1403_v56 = vmul.f32 %v1399_v54, %v1399_v54  ;;  %v1400_v57 = vsub.f32 %v1285_v41, %v1396_v55 }
 0x272   :  { %v1407_v58 = vrot.slane %v1403_v56, 4  ;;  %v1404_v59 = vmul.f32 %v1400_v57, %v1400_v57 }
 0x274   :  { %v1408_v60 = vadd.f32 %v1407_v58, %v1403_v56  ;;  %v1413_v61 = vrot.slane %v1404_v59, 4 }
 0x276   :  { %v1409_v62 = vrot.slane %v1408_v60, 2  ;;  %v1414_v1 = vadd.f32 %v1413_v61, %v1404_v59 }
 0x278   :  { %v1410_v2 = vadd.f32 %v1409_v62, %v1408_v60  ;;  %v1415_v63 = vrot.slane %v1414_v1, 2 }
 0x27a   :  { %v1411_v3 = vrot.slane %v1410_v2, 1  ;;  %v1416_v4 = vadd.f32 %v1415_v63, %v1414_v1 }
 0x27c   :  { %v1412_v7 = vadd.f32 %v1411_v3, %v1410_v2  ;;  %v1417_v8 = vrot.slane %v1416_v4, 1 }
 0x27e   :  { %v1431_v9 = vmul.f32 0.125, %v1412_v7  ;;  %v1418_v0 = vadd.f32 %v1417_v8, %v1416_v4 }
 0x280   :  { %v1435_v10 = vadd.f32 1e-05, %v1431_v9  ;;  %v1432_v16 = vmul.f32 0.125, %v1418_v0 }
 0x282   :  { %3129 = vrsqrt.f32 %v1435_v10  ;;  %v1436_v5 = vadd.f32 1e-05, %v1432_v16 }
 0x284   :  { %3131 = vrsqrt.f32 %v1436_v5 }
 0x28f   :  { %v3130_v22 = vpop.eup %3129 }
 0x290   :  { %v1443_v23 = vmul.f32 %v3130_v22, %v1399_v54 }
 0x291   :  { %v3132_v26 = vpop.eup %3131 }
 0x292   :  { %v1469_v27 = vmul.f32 %v1452_v21, %v1443_v23  ;;  %v1444_v28 = vmul.f32 %v3132_v26, %v1400_v57  ;;  %v1460_v23 = vrot.slane %v3708_v18, %v3666_v12  ;;  %v1486_v26 = vrot.slane %v3710_v19, %v3666_v12 }
 0x294   :  { %v1495_v30 = vadd.f32 %v1478_v24, %v1469_v27  ;;  %v1470_v33 = vmul.f32 %v1456_v25, %v1444_v28  ;;  %v1464_v27 = vrot.slane %v3708_v18, %v3670_v15 }
 0x296   :  { %v1499_v34 = vmul.f32 0.01, %v1495_v30  ;;  %v1496_v35 = vadd.f32 %v1482_v29, %v1470_v33  ;;  %v1490_v33 = vrot.slane %v3710_v19, %v3670_v15 }
 0x298   :  { %v3720_v36 = vmax.f32 %v1495_v30, %v1499_v34  ;;  %v1500_v37 = vmul.f32 0.01, %v1496_v35 }
 0x29a   :  { %v3722_v38 = vmax.f32 %v1496_v35, %v1500_v37 }
 0x29c   :  { %v1323_v13 = vpop.f32.mrf.mxu0 }
 0x29d   :  { %v1364_v17 = vpop.f32.mrf.mxu1 }
 0x29e   :  { %v1365_v39 = vadd.f32 %v1364_v17, %v1323_v13  ;;  %v1325_v40 = vpop.f32.mrf.mxu0 }
 0x29f   :  { %v1366_v41 = vpop.f32.mrf.mxu1 }
 0x2a0   :  { %v1383_v42 = vrot.slane %v1365_v39, 4  ;;  %v1367_v43 = vadd.f32 %v1366_v41, %v1325_v40  ;;  %v1327_v44 = vpop.f32.mrf.mxu0 }
 0x2a1   :  { %v1368_v45 = vpop.f32.mrf.mxu1 }
 0x2a2   :  { %v1384_v46 = vadd.f32 %v1383_v42, %v1365_v39  ;;  %v1389_v47 = vrot.slane %v1367_v43, 4  ;;  %v1328_v6 = vpop.f32.mrf.mxu0 }
 0x2a3   :  { %v1369_v20 = vpop.f32.mrf.mxu1 }
 0x2a4   :  { %v1385_v48 = vrot.slane %v1384_v46, 2  ;;  %v1390_v49 = vadd.f32 %v1389_v47, %v1367_v43 }
 0x2a6   :  { %v1386_v31 = vadd.f32 %v1385_v48, %v1384_v46  ;;  %v1391_v50 = vrot.slane %v1390_v49, 2 }
 0x2a8   :  { %v1387_v32 = vrot.slane %v1386_v31, 1  ;;  %v1392_v51 = vadd.f32 %v1391_v50, %v1390_v49 }
 0x2aa   :  { %v1388_v52 = vadd.f32 %v1387_v32, %v1386_v31  ;;  %v1393_v53 = vrot.slane %v1392_v51, 1 }
 0x2ac   :  { %v1397_v54 = vmul.f32 0.125, %v1388_v52  ;;  %v1394_v55 = vadd.f32 %v1393_v53, %v1392_v51 }
 0x2ae   :  { %v1401_v56 = vsub.f32 %v1365_v39, %v1397_v54  ;;  %v1398_v57 = vmul.f32 0.125, %v1394_v55 }
 0x2b0   :  { %v1405_v58 = vmul.f32 %v1401_v56, %v1401_v56  ;;  %v1402_v59 = vsub.f32 %v1367_v43, %v1398_v57 }
 0x2b2   :  { %v1419_v60 = vrot.slane %v1405_v58, 4  ;;  %v1406_v61 = vmul.f32 %v1402_v59, %v1402_v59 }
 0x2b4   :  { %v1420_v62 = vadd.f32 %v1419_v60, %v1405_v58  ;;  %v1425_v1 = vrot.slane %v1406_v61, 4 }
 0x2b6   :  { %v1421_v2 = vrot.slane %v1420_v62, 2  ;;  %v1426_v63 = vadd.f32 %v1425_v1, %v1406_v61 }
 0x2b8   :  { %v1422_v3 = vadd.f32 %v1421_v2, %v1420_v62  ;;  %v1427_v4 = vrot.slane %v1426_v63, 2 }
 0x2ba   :  { %v1423_v7 = vrot.slane %v1422_v3, 1  ;;  %v1428_v8 = vadd.f32 %v1427_v4, %v1426_v63 }
 0x2bc   :  { %v1424_v9 = vadd.f32 %v1423_v7, %v1422_v3  ;;  %v1429_v0 = vrot.slane %v1428_v8, 1 }
 0x2be   :  { %v1433_v10 = vmul.f32 0.125, %v1424_v9  ;;  %v1430_v16 = vadd.f32 %v1429_v0, %v1428_v8 }
 0x2c0   :  { %v1437_v5 = vadd.f32 1e-05, %v1433_v10  ;;  %v1434_v21 = vmul.f32 0.125, %v1430_v16 }
 0x2c2   :  { %3133 = vrsqrt.f32 %v1437_v5  ;;  %v1438_v22 = vadd.f32 1e-05, %v1434_v21 }
 0x2c4   :  { %3135 = vrsqrt.f32 %v1438_v22 }
 0x2cf   :  { %v3134_v24 = vpop.eup %3133 }
 0x2d0   :  { %v1445_v25 = vmul.f32 %v3134_v24, %v1401_v56 }
 0x2d1   :  { %v3136_v28 = vpop.eup %3135 }
 0x2d2   :  { %v1471_v29 = vmul.f32 %v1460_v23, %v1445_v25  ;;  %v1446_v30 = vmul.f32 %v3136_v28, %v1402_v59 }
 0x2d4   :  { %v1497_v34 = vadd.f32 %v1486_v26, %v1471_v29  ;;  %v1472_v35 = vmul.f32 %v1464_v27, %v1446_v30 }
 0x2d6   :  { %v1501_v37 = vmul.f32 0.01, %v1497_v34  ;;  %v1498_v13 = vadd.f32 %v1490_v33, %v1472_v35 }
 0x2d8   :  { %v3732_v17 = vmax.f32 %v1497_v34, %v1501_v37  ;;  %v1502_v39 = vmul.f32 0.01, %v1498_v13 }
 0x2da   :  { %v1506_v40 = vmax.f32 %v1498_v13, %v1502_v39 }
 0x2db   :  { %3529 = dma.done.wait [#allocation4 + $0x1], 16384 }
 0x2dc   :  { %3530 = vsyncadd [#allocation4 + $0x1], 4294950912  ;;  %v3736_v41 = vpack.c.bf16 %v3722_v38, %v3722_v38  ;;  %v3738_v18 = vpack.c.bf16 %v1506_v40, %v1506_v40  ;;  %v3137_v19 = vld [vmem:[#allocation3 + $0xe4] ss:$16 sps:$4 sm:$0xff]   ;;  %v3141_v43 = vld [vmem:[#allocation3 + $0xe0] ss:$16 sps:$4 sm:$0xff]  }
 0x2dd   :  { %v3139_v42 = vld [vmem:[#allocation3 + $0x2e4] ss:$16 sps:$4 sm:$0xff]   ;;  %2281 = vmatprep.subr.bf16.mxu0 %v3137_v19  ;;  %v3142_v44 = vld [vmem:[#allocation3 + $0x2e0] ss:$16 sps:$4 sm:$0xff]   ;;  %vm2624_vm1 = vcmask 7168  }
 0x2de   :  { %2313 = vmatprep.mubr.bf16.mxu0 %v3736_v41  ;;  %2354 = vmatprep.mubr.bf16.mxu1 %v3738_v18  ;;  %v3143_v45 = vld [vmem:[#allocation3 + $0xc4] ss:$16 sps:$4 sm:$0xff]   ;;  %v3147_v47 = vld [vmem:[#allocation3 + $0xc0] ss:$16 sps:$4 sm:$0xff]  }
 0x2df   :  { %2322 = vmatprep.subr.bf16.mxu1 %v3139_v42  ;;  %2282 = vmatpush1.bf16.msra.mxu0 %v3141_v43  ;;  %v3145_v46 = vld [vmem:[#allocation3 + $0x2c4] ss:$16 sps:$4 sm:$0xff]   ;;  %v3148_v38 = vld [vmem:[#allocation3 + $0x2c0] ss:$16 sps:$4 sm:$0xff]  }
 0x2e0   :  { %2323 = vmatpush1.bf16.msra.mxu1 %v3142_v44  ;;  %2283 = vmatprep.subr.bf16.mxu0 %v3143_v45  ;;  %v3149_v6 = vld [vmem:[#allocation3 + $0xa4] ss:$16 sps:$4 sm:$0xff]   ;;  %v3153_v48 = vld [vmem:[#allocation3 + $0xa0] ss:$16 sps:$4 sm:$0xff]  }
 0x2e1   :  { %2324 = vmatprep.subr.bf16.mxu1 %v3145_v46  ;;  %v3151_v20 = vld [vmem:[#allocation3 + $0x2a4] ss:$16 sps:$4 sm:$0xff]   ;;  %v3154_v49 = vld [vmem:[#allocation3 + $0x2a0] ss:$16 sps:$4 sm:$0xff]  }
 0x2e2   :  { %v3155_v31 = vld [vmem:[#allocation3 + $0x84] ss:$16 sps:$4 sm:$0xff]   ;;  %v3159_v32 = vld [vmem:[#allocation3 + $0x80] ss:$16 sps:$4 sm:$0xff]  }
 0x2e3   :  { %2284 = vmatpush1.bf16.msra.mxu0 %v3147_v47  ;;  %v3157_v50 = vld [vmem:[#allocation3 + $0x284] ss:$16 sps:$4 sm:$0xff]   ;;  %v3160_v51 = vld [vmem:[#allocation3 + $0x280] ss:$16 sps:$4 sm:$0xff]  }
 0x2e4   :  { %2325 = vmatpush1.bf16.msra.mxu1 %v3148_v38  ;;  %2285 = vmatprep.subr.bf16.mxu0 %v3149_v6  ;;  %v3161_v52 = vld [vmem:[#allocation3 + $0x64] ss:$16 sps:$4 sm:$0xff]   ;;  %v3165_v54 = vld [vmem:[#allocation3 + $0x60] ss:$16 sps:$4 sm:$0xff]   ;;  %v3235_v6 = vld [vmem:[#allocation3 + $0xec] ss:$16 sps:$4 sm:$0xff]  }
 0x2e5   :  { %2326 = vmatprep.subr.bf16.mxu1 %v3151_v20  ;;  %v3163_v53 = vld [vmem:[#allocation3 + $0x264] ss:$16 sps:$4 sm:$0xff]   ;;  %v3166_v55 = vld [vmem:[#allocation3 + $0x260] ss:$16 sps:$4 sm:$0xff]   ;;  %v3238_v20 = vld [vmem:[#allocation3 + $0x2ec] ss:$16 sps:$4 sm:$0xff]  }
 0x2e6   :  { %v3167_v56 = vld [vmem:[#allocation3 + $0x44] ss:$16 sps:$4 sm:$0xff]   ;;  %v3171_v58 = vld [vmem:[#allocation3 + $0x40] ss:$16 sps:$4 sm:$0xff]  }
 0x2e7   :  { %2286 = vmatpush1.bf16.msra.mxu0 %v3153_v48  ;;  %v3169_v57 = vld [vmem:[#allocation3 + $0x244] ss:$16 sps:$4 sm:$0xff]   ;;  %v3172_v59 = vld [vmem:[#allocation3 + $0x240] ss:$16 sps:$4 sm:$0xff]   ;;  %v3744_v48 = vpack.c.bf16 %v3720_v36, %v3720_v36  ;;  %v3247_v36 = vld [vmem:[#allocation3 + $0xac] ss:$16 sps:$4 sm:$0xff]  }
 0x2e8   :  { %2327 = vmatpush1.bf16.msra.mxu1 %v3154_v49  ;;  %2287 = vmatprep.subr.bf16.mxu0 %v3155_v31  ;;  %v3173_v60 = vld [vmem:[#allocation3 + $0x24] ss:$16 sps:$4 sm:$0xff]   ;;  %v3177_v62 = vld [vmem:[#allocation3 + $0x20] ss:$16 sps:$4 sm:$0xff]   ;;  %v3748_v49 = vpack.c.bf16 %v3732_v17, %v3732_v17  ;;  %v3233_v31 = vld [vmem:[#allocation3 + $0xe8] ss:$16 sps:$4 sm:$0xff]  }
 0x2e9   :  { %2328 = vmatprep.subr.bf16.mxu1 %v3157_v50  ;;  %v3175_v61 = vld [vmem:[#allocation3 + $0x224] ss:$16 sps:$4 sm:$0xff]   ;;  %v3178_v1 = vld [vmem:[#allocation3 + $0x220] ss:$16 sps:$4 sm:$0xff]   ;;  %v3236_v50 = vld [vmem:[#allocation3 + $0x2e8] ss:$16 sps:$4 sm:$0xff]  }
 0x2ea   :  { %v3179_v2 = vld [vmem:[#allocation3 + $0x4] ss:$16 sps:$4 sm:$0xff]   ;;  %v3183_v3 = vld [vmem:[#allocation3] ss:$16 sps:$4 sm:$0xff]   ;;  %v3250_v17 = vld [vmem:[#allocation3 + $0x2ac] ss:$16 sps:$4 sm:$0xff]  }
 0x2eb   :  { %2288 = vmatpush1.bf16.msra.mxu0 %v3159_v32  ;;  %v3181_v63 = vld [vmem:[#allocation3 + $0x204] ss:$16 sps:$4 sm:$0xff]   ;;  %v3184_v4 = vld [vmem:[#allocation3 + $0x200] ss:$16 sps:$4 sm:$0xff]   ;;  %v3241_v32 = vld [vmem:[#allocation3 + $0xcc] ss:$16 sps:$4 sm:$0xff]  }
 0x2ec   :  { %2329 = vmatpush1.bf16.msra.mxu1 %v3160_v51  ;;  %2289 = vmatprep.subr.bf16.mxu0 %v3161_v52  ;;  %v3185_v7 = vld [vmem:[#allocation3 + $0x1e4] ss:$16 sps:$4 sm:$0xff]   ;;  %v3189_v9 = vld [vmem:[#allocation3 + $0x1e0] ss:$16 sps:$4 sm:$0xff]   ;;  %v3244_v51 = vld [vmem:[#allocation3 + $0x2cc] ss:$16 sps:$4 sm:$0xff]  }
 0x2ed   :  { %2330 = vmatprep.subr.bf16.mxu1 %v3163_v53  ;;  %v3187_v8 = vld [vmem:[#allocation3 + $0x3e4] ss:$16 sps:$4 sm:$0xff]   ;;  %v3190_v0 = vld [vmem:[#allocation3 + $0x3e0] ss:$16 sps:$4 sm:$0xff]   ;;  %v3239_v52 = vld [vmem:[#allocation3 + $0xc8] ss:$16 sps:$4 sm:$0xff]  }
 0x2ee   :  { %v3191_v10 = vld [vmem:[#allocation3 + $0x1c4] ss:$16 sps:$4 sm:$0xff]   ;;  %v3195_v5 = vld [vmem:[#allocation3 + $0x1c0] ss:$16 sps:$4 sm:$0xff]   ;;  %v3242_v53 = vld [vmem:[#allocation3 + $0x2c8] ss:$16 sps:$4 sm:$0xff]  }
 0x2ef   :  { %2290 = vmatpush1.bf16.msra.mxu0 %v3165_v54  ;;  %v3193_v16 = vld [vmem:[#allocation3 + $0x3c4] ss:$16 sps:$4 sm:$0xff]   ;;  %v3196_v21 = vld [vmem:[#allocation3 + $0x3c0] ss:$16 sps:$4 sm:$0xff]   ;;  %v3245_v54 = vld [vmem:[#allocation3 + $0xa8] ss:$16 sps:$4 sm:$0xff]  }
 0x2f0   :  { %2331 = vmatpush1.bf16.msra.mxu1 %v3166_v55  ;;  %2291 = vmatprep.subr.bf16.mxu0 %v3167_v56  ;;  %v3197_v22 = vld [vmem:[#allocation3 + $0x1a4] ss:$16 sps:$4 sm:$0xff]   ;;  %v3201_v24 = vld [vmem:[#allocation3 + $0x1a0] ss:$16 sps:$4 sm:$0xff]   ;;  %v3248_v55 = vld [vmem:[#allocation3 + $0x2a8] ss:$16 sps:$4 sm:$0xff]  }
 0x2f1   :  { %2332 = vmatprep.subr.bf16.mxu1 %v3169_v57  ;;  %v3199_v23 = vld [vmem:[#allocation3 + $0x3a4] ss:$16 sps:$4 sm:$0xff]   ;;  %v3202_v25 = vld [vmem:[#allocation3 + $0x3a0] ss:$16 sps:$4 sm:$0xff]   ;;  %v3253_v56 = vld [vmem:[#allocation3 + $0x8c] ss:$16 sps:$4 sm:$0xff]  }
 0x2f2   :  { %v3203_v26 = vld [vmem:[#allocation3 + $0x184] ss:$16 sps:$4 sm:$0xff]   ;;  %v3207_v28 = vld [vmem:[#allocation3 + $0x180] ss:$16 sps:$4 sm:$0xff]   ;;  %v3256_v57 = vld [vmem:[#allocation3 + $0x28c] ss:$16 sps:$4 sm:$0xff]  }
 0x2f3   :  { %2292 = vmatpush1.bf16.msra.mxu0 %v3171_v58  ;;  %v3205_v27 = vld [vmem:[#allocation3 + $0x384] ss:$16 sps:$4 sm:$0xff]   ;;  %v3208_v29 = vld [vmem:[#allocation3 + $0x380] ss:$16 sps:$4 sm:$0xff]   ;;  %v3251_v58 = vld [vmem:[#allocation3 + $0x88] ss:$16 sps:$4 sm:$0xff]  }
 0x2f4   :  { %2333 = vmatpush1.bf16.msra.mxu1 %v3172_v59  ;;  %2293 = vmatprep.subr.bf16.mxu0 %v3173_v60  ;;  %v3209_v30 = vld [vmem:[#allocation3 + $0x164] ss:$16 sps:$4 sm:$0xff]   ;;  %v3213_v34 = vld [vmem:[#allocation3 + $0x160] ss:$16 sps:$4 sm:$0xff]   ;;  %v3254_v59 = vld [vmem:[#allocation3 + $0x288] ss:$16 sps:$4 sm:$0xff]  }
 0x2f5   :  { %2334 = vmatprep.subr.bf16.mxu1 %v3175_v61  ;;  %v3211_v33 = vld [vmem:[#allocation3 + $0x364] ss:$16 sps:$4 sm:$0xff]   ;;  %v3214_v35 = vld [vmem:[#allocation3 + $0x360] ss:$16 sps:$4 sm:$0xff]   ;;  %v3259_v60 = vld [vmem:[#allocation3 + $0x6c] ss:$16 sps:$4 sm:$0xff]  }
 0x2f6   :  { %v3215_v37 = vld [vmem:[#allocation3 + $0x144] ss:$16 sps:$4 sm:$0xff]   ;;  %v3219_v39 = vld [vmem:[#allocation3 + $0x140] ss:$16 sps:$4 sm:$0xff]   ;;  %v3262_v61 = vld [vmem:[#allocation3 + $0x26c] ss:$16 sps:$4 sm:$0xff]  }
 0x2f7   :  { %2294 = vmatpush1.bf16.msra.mxu0 %v3177_v62  ;;  %v3217_v13 = vld [vmem:[#allocation3 + $0x344] ss:$16 sps:$4 sm:$0xff]   ;;  %v3220_v40 = vld [vmem:[#allocation3 + $0x340] ss:$16 sps:$4 sm:$0xff]   ;;  %v3257_v62 = vld [vmem:[#allocation3 + $0x68] ss:$16 sps:$4 sm:$0xff]  }
 0x2f8   :  { %2335 = vmatpush1.bf16.msra.mxu1 %v3178_v1  ;;  %2295 = vmatprep.subr.bf16.mxu0 %v3179_v2  ;;  %v3221_v19 = vld [vmem:[#allocation3 + $0x124] ss:$16 sps:$4 sm:$0xff]   ;;  %v3225_v43 = vld [vmem:[#allocation3 + $0x120] ss:$16 sps:$4 sm:$0xff]   ;;  %v3268_v1 = vld [vmem:[#allocation3 + $0x24c] ss:$16 sps:$4 sm:$0xff]  }
 0x2f9   :  { %2336 = vmatprep.subr.bf16.mxu1 %v3181_v63  ;;  %v3223_v42 = vld [vmem:[#allocation3 + $0x324] ss:$16 sps:$4 sm:$0xff]   ;;  %v3226_v44 = vld [vmem:[#allocation3 + $0x320] ss:$16 sps:$4 sm:$0xff]   ;;  %v3263_v2 = vld [vmem:[#allocation3 + $0x48] ss:$16 sps:$4 sm:$0xff]  }
 0x2fa   :  { %v3227_v45 = vld [vmem:[#allocation3 + $0x104] ss:$16 sps:$4 sm:$0xff]   ;;  %v3231_v47 = vld [vmem:[#allocation3 + $0x100] ss:$16 sps:$4 sm:$0xff]   ;;  %v3266_v63 = vld [vmem:[#allocation3 + $0x248] ss:$16 sps:$4 sm:$0xff]  }
 0x2fb   :  { %2296 = vmatpush1.bf16.msra.mxu0 %v3183_v3  ;;  %v3229_v46 = vld [vmem:[#allocation3 + $0x304] ss:$16 sps:$4 sm:$0xff]   ;;  %v3232_v38 = vld [vmem:[#allocation3 + $0x300] ss:$16 sps:$4 sm:$0xff]   ;;  %v3271_v3 = vld [vmem:[#allocation3 + $0x2c] ss:$16 sps:$4 sm:$0xff]  }
 0x2fc   :  { %2337 = vmatpush1.bf16.msra.mxu1 %v3184_v4  ;;  %2297 = vmatprep.subr.bf16.mxu0 %v3185_v7  ;;  %v3274_v4 = vld [vmem:[#allocation3 + $0x22c] ss:$16 sps:$4 sm:$0xff]   ;;  %v3269_v7 = vld [vmem:[#allocation3 + $0x28] ss:$16 sps:$4 sm:$0xff]  }
 0x2fd   :  { %2338 = vmatprep.subr.bf16.mxu1 %v3187_v8  ;;  %v3272_v8 = vld [vmem:[#allocation3 + $0x228] ss:$16 sps:$4 sm:$0xff]  }
 0x2ff   :  { %2298 = vmatpush2.bf16.msra.mxu0 %v3189_v9  ;;  %v3277_v9 = vld [vmem:[#allocation3 + $0xc] ss:$16 sps:$4 sm:$0xff]  }
 0x300   :  { %2339 = vmatpush2.bf16.msra.mxu1 %v3190_v0  ;;  %2299 = vmatprep.subr.bf16.mxu0 %v3191_v10  ;;  %v3280_v0 = vld [vmem:[#allocation3 + $0x20c] ss:$16 sps:$4 sm:$0xff]   ;;  %v3275_v10 = vld [vmem:[#allocation3 + $0x8] ss:$16 sps:$4 sm:$0xff]  }
 0x301   :  { %2340 = vmatprep.subr.bf16.mxu1 %v3193_v16  ;;  %v3278_v16 = vld [vmem:[#allocation3 + $0x208] ss:$16 sps:$4 sm:$0xff]  }
 0x303   :  { %2300 = vmatpush2.bf16.msra.mxu0 %v3195_v5  ;;  %v3283_v5 = vld [vmem:[#allocation3 + $0x1ec] ss:$16 sps:$4 sm:$0xff]  }
 0x304   :  { %2341 = vmatpush2.bf16.msra.mxu1 %v3196_v21  ;;  %2301 = vmatprep.subr.bf16.mxu0 %v3197_v22  ;;  %v3286_v21 = vld [vmem:[#allocation3 + $0x3ec] ss:$16 sps:$4 sm:$0xff]   ;;  %v3281_v22 = vld [vmem:[#allocation3 + $0x1e8] ss:$16 sps:$4 sm:$0xff]  }
 0x305   :  { %2342 = vmatprep.subr.bf16.mxu1 %v3199_v23  ;;  %v3284_v23 = vld [vmem:[#allocation3 + $0x3e8] ss:$16 sps:$4 sm:$0xff]  }
 0x307   :  { %2302 = vmatpush2.bf16.msra.mxu0 %v3201_v24  ;;  %v3289_v24 = vld [vmem:[#allocation3 + $0x1cc] ss:$16 sps:$4 sm:$0xff]  }
 0x308   :  { %2343 = vmatpush2.bf16.msra.mxu1 %v3202_v25  ;;  %2303 = vmatprep.subr.bf16.mxu0 %v3203_v26  ;;  %v3292_v25 = vld [vmem:[#allocation3 + $0x3cc] ss:$16 sps:$4 sm:$0xff]   ;;  %v3287_v26 = vld [vmem:[#allocation3 + $0x1c8] ss:$16 sps:$4 sm:$0xff]  }
 0x309   :  { %2344 = vmatprep.subr.bf16.mxu1 %v3205_v27  ;;  %v3290_v27 = vld [vmem:[#allocation3 + $0x3c8] ss:$16 sps:$4 sm:$0xff]  }
 0x30b   :  { %2304 = vmatpush2.bf16.msra.mxu0 %v3207_v28  ;;  %v3295_v28 = vld [vmem:[#allocation3 + $0x1ac] ss:$16 sps:$4 sm:$0xff]  }
 0x30c   :  { %2345 = vmatpush2.bf16.msra.mxu1 %v3208_v29  ;;  %2305 = vmatprep.subr.bf16.mxu0 %v3209_v30  ;;  %v3298_v29 = vld [vmem:[#allocation3 + $0x3ac] ss:$16 sps:$4 sm:$0xff]   ;;  %v3293_v30 = vld [vmem:[#allocation3 + $0x1a8] ss:$16 sps:$4 sm:$0xff]  }
 0x30d   :  { %2346 = vmatprep.subr.bf16.mxu1 %v3211_v33  ;;  %v3296_v33 = vld [vmem:[#allocation3 + $0x3a8] ss:$16 sps:$4 sm:$0xff]  }
 0x30f   :  { %2306 = vmatpush2.bf16.msra.mxu0 %v3213_v34  ;;  %v3301_v34 = vld [vmem:[#allocation3 + $0x18c] ss:$16 sps:$4 sm:$0xff]  }
 0x310   :  { %2347 = vmatpush2.bf16.msra.mxu1 %v3214_v35  ;;  %2307 = vmatprep.subr.bf16.mxu0 %v3215_v37  ;;  %v3304_v35 = vld [vmem:[#allocation3 + $0x38c] ss:$16 sps:$4 sm:$0xff]   ;;  %v3299_v37 = vld [vmem:[#allocation3 + $0x188] ss:$16 sps:$4 sm:$0xff]  }
 0x311   :  { %2348 = vmatprep.subr.bf16.mxu1 %v3217_v13  ;;  %v3302_v13 = vld [vmem:[#allocation3 + $0x388] ss:$16 sps:$4 sm:$0xff]  }
 0x313   :  { %2308 = vmatpush2.bf16.msra.mxu0 %v3219_v39  ;;  %v3307_v39 = vld [vmem:[#allocation3 + $0x16c] ss:$16 sps:$4 sm:$0xff]  }
 0x314   :  { %2349 = vmatpush2.bf16.msra.mxu1 %v3220_v40  ;;  %2309 = vmatprep.subr.bf16.mxu0 %v3221_v19  ;;  %v3310_v40 = vld [vmem:[#allocation3 + $0x36c] ss:$16 sps:$4 sm:$0xff]   ;;  %v3305_v19 = vld [vmem:[#allocation3 + $0x168] ss:$16 sps:$4 sm:$0xff]  }
 0x315   :  { %2350 = vmatprep.subr.bf16.mxu1 %v3223_v42  ;;  %v3308_v42 = vld [vmem:[#allocation3 + $0x368] ss:$16 sps:$4 sm:$0xff]  }
 0x317   :  { %2310 = vmatpush2.bf16.msra.mxu0 %v3225_v43  ;;  %v3313_v43 = vld [vmem:[#allocation3 + $0x14c] ss:$16 sps:$4 sm:$0xff]  }
 0x318   :  { %2351 = vmatpush2.bf16.msra.mxu1 %v3226_v44  ;;  %2311 = vmatprep.subr.bf16.mxu0 %v3227_v45  ;;  %v3316_v44 = vld [vmem:[#allocation3 + $0x34c] ss:$16 sps:$4 sm:$0xff]   ;;  %v3311_v45 = vld [vmem:[#allocation3 + $0x148] ss:$16 sps:$4 sm:$0xff]  }
 0x319   :  { %2352 = vmatprep.subr.bf16.mxu1 %v3229_v46  ;;  %v3314_v46 = vld [vmem:[#allocation3 + $0x348] ss:$16 sps:$4 sm:$0xff]  }
 0x31b   :  { %2312 = vmatpush2.bf16.msra.mxu0 %v3231_v47  ;;  %v3319_v47 = vld [vmem:[#allocation3 + $0x12c] ss:$16 sps:$4 sm:$0xff]  }
 0x31c   :  { %2353 = vmatpush2.bf16.msra.mxu1 %v3232_v38  ;;  %2363 = vmatprep.subr.bf16.mxu0 %v3235_v6  ;;  %v3322_v38 = vld [vmem:[#allocation3 + $0x32c] ss:$16 sps:$4 sm:$0xff]   ;;  %v3317_v6 = vld [vmem:[#allocation3 + $0x128] ss:$16 sps:$4 sm:$0xff]  }
 0x31d   :  { %2404 = vmatprep.subr.bf16.mxu1 %v3238_v20  ;;  %v3320_v20 = vld [vmem:[#allocation3 + $0x328] ss:$16 sps:$4 sm:$0xff]  }
 0x31e   :  { %2314 = vmatmul.mubr.bf16.vlgmr.msra.gmra.mxu0 %v3744_v48 }
 0x31f   :  { %2355 = vmatmul.mubr.bf16.vlgmr.msra.gmra.mxu1 %v3748_v49  ;;  %2364 = vmatpush1.bf16.msra.mxu0 %v3233_v31  ;;  %v3325_v31 = vld [vmem:[#allocation3 + $0x10c] ss:$16 sps:$4 sm:$0xff]  }
 0x320   :  { %2405 = vmatpush1.bf16.msra.mxu1 %v3236_v50  ;;  %2365 = vmatprep.subr.bf16.mxu0 %v3241_v32  ;;  %v3328_v50 = vld [vmem:[#allocation3 + $0x30c] ss:$16 sps:$4 sm:$0xff]   ;;  %v3323_v32 = vld [vmem:[#allocation3 + $0x108] ss:$16 sps:$4 sm:$0xff]  }
 0x321   :  { %2406 = vmatprep.subr.bf16.mxu1 %v3244_v51  ;;  %2395 = vmatprep.mubr.bf16.mxu0 %v3736_v41  ;;  %v3260_v41 = vld [vmem:[#allocation3 + $0x268] ss:$16 sps:$4 sm:$0xff]  }
 0x322   :  { %2436 = vmatprep.mubr.bf16.mxu1 %v3738_v18  ;;  %v3265_v18 = vld [vmem:[#allocation3 + $0x4c] ss:$16 sps:$4 sm:$0xff]   ;;  %v3326_v51 = vld [vmem:[#allocation3 + $0x308] ss:$16 sps:$4 sm:$0xff]  }
 0x323   :  { %2366 = vmatpush1.bf16.msra.mxu0 %v3239_v52 }
 0x324   :  { %2407 = vmatpush1.bf16.msra.mxu1 %v3242_v53  ;;  %2367 = vmatprep.subr.bf16.mxu0 %v3247_v36 }
 0x325   :  { %2408 = vmatprep.subr.bf16.mxu1 %v3250_v17 }
 0x327   :  { %2368 = vmatpush1.bf16.msra.mxu0 %v3245_v54 }
 0x328   :  { %2409 = vmatpush1.bf16.msra.mxu1 %v3248_v55  ;;  %2369 = vmatprep.subr.bf16.mxu0 %v3253_v56 }
 0x329   :  { %2410 = vmatprep.subr.bf16.mxu1 %v3256_v57 }
 0x32b   :  { %2370 = vmatpush1.bf16.msra.mxu0 %v3251_v58 }
 0x32c   :  { %2411 = vmatpush1.bf16.msra.mxu1 %v3254_v59  ;;  %2371 = vmatprep.subr.bf16.mxu0 %v3259_v60 }
 0x32d   :  { %2412 = vmatprep.subr.bf16.mxu1 %v3262_v61 }
 0x32f   :  { %2372 = vmatpush1.bf16.msra.mxu0 %v3257_v62 }
 0x330   :  { %2413 = vmatpush1.bf16.msra.mxu1 %v3260_v41  ;;  %2373 = vmatprep.subr.bf16.mxu0 %v3265_v18 }
 0x331   :  { %2414 = vmatprep.subr.bf16.mxu1 %v3268_v1 }
 0x333   :  { %2374 = vmatpush1.bf16.msra.mxu0 %v3263_v2 }
 0x334   :  { %2415 = vmatpush1.bf16.msra.mxu1 %v3266_v63  ;;  %2375 = vmatprep.subr.bf16.mxu0 %v3271_v3 }
 0x335   :  { %2416 = vmatprep.subr.bf16.mxu1 %v3274_v4 }
 0x337   :  { %2376 = vmatpush1.bf16.msra.mxu0 %v3269_v7 }
 0x338   :  { %2417 = vmatpush1.bf16.msra.mxu1 %v3272_v8  ;;  %2377 = vmatprep.subr.bf16.mxu0 %v3277_v9 }
 0x339   :  { %2418 = vmatprep.subr.bf16.mxu1 %v3280_v0 }
 0x33b   :  { %2378 = vmatpush1.bf16.msra.mxu0 %v3275_v10 }
 0x33c   :  { %2419 = vmatpush1.bf16.msra.mxu1 %v3278_v16  ;;  %2379 = vmatprep.subr.bf16.mxu0 %v3283_v5 }
 0x33d   :  { %2420 = vmatprep.subr.bf16.mxu1 %v3286_v21 }
 0x33f   :  { %2380 = vmatpush2.bf16.msra.mxu0 %v3281_v22 }
 0x340   :  { %2421 = vmatpush2.bf16.msra.mxu1 %v3284_v23  ;;  %2381 = vmatprep.subr.bf16.mxu0 %v3289_v24 }
 0x341   :  { %2422 = vmatprep.subr.bf16.mxu1 %v3292_v25 }
 0x343   :  { %2382 = vmatpush2.bf16.msra.mxu0 %v3287_v26 }
 0x344   :  { %2423 = vmatpush2.bf16.msra.mxu1 %v3290_v27  ;;  %2383 = vmatprep.subr.bf16.mxu0 %v3295_v28 }
 0x345   :  { %2424 = vmatprep.subr.bf16.mxu1 %v3298_v29 }
 0x347   :  { %2384 = vmatpush2.bf16.msra.mxu0 %v3293_v30 }
 0x348   :  { %2425 = vmatpush2.bf16.msra.mxu1 %v3296_v33  ;;  %2385 = vmatprep.subr.bf16.mxu0 %v3301_v34 }
 0x349   :  { %2426 = vmatprep.subr.bf16.mxu1 %v3304_v35 }
 0x34b   :  { %2386 = vmatpush2.bf16.msra.mxu0 %v3299_v37 }
 0x34c   :  { %2427 = vmatpush2.bf16.msra.mxu1 %v3302_v13  ;;  %2387 = vmatprep.subr.bf16.mxu0 %v3307_v39 }
 0x34d   :  { %2428 = vmatprep.subr.bf16.mxu1 %v3310_v40 }
 0x34f   :  { %2388 = vmatpush2.bf16.msra.mxu0 %v3305_v19 }
 0x350   :  { %2429 = vmatpush2.bf16.msra.mxu1 %v3308_v42  ;;  %2389 = vmatprep.subr.bf16.mxu0 %v3313_v43 }
 0x351   :  { %2430 = vmatprep.subr.bf16.mxu1 %v3316_v44 }
 0x353   :  { %2390 = vmatpush2.bf16.msra.mxu0 %v3311_v45 }
 0x354   :  { %2431 = vmatpush2.bf16.msra.mxu1 %v3314_v46  ;;  %2391 = vmatprep.subr.bf16.mxu0 %v3319_v47 }
 0x355   :  { %2432 = vmatprep.subr.bf16.mxu1 %v3322_v38 }
 0x357   :  { %2392 = vmatpush2.bf16.msra.mxu0 %v3317_v6 }
 0x358   :  { %2433 = vmatpush2.bf16.msra.mxu1 %v3320_v20  ;;  %2393 = vmatprep.subr.bf16.mxu0 %v3325_v31 }
 0x359   :  { %2434 = vmatprep.subr.bf16.mxu1 %v3328_v50 }
 0x35b   :  { %2394 = vmatpush2.bf16.msra.mxu0 %v3323_v32 }
 0x35c   :  { %2435 = vmatpush2.bf16.msra.mxu1 %v3326_v51 }
 0x35e   :  { %2396 = vmatmul.mubr.bf16.vlgmr.msra.gmra.mxu0 %v3744_v48 }
 0x35f   :  { %2437 = vmatmul.mubr.bf16.vlgmr.msra.gmra.mxu1 %v3748_v49 }
 0x3de   :  { %v2315_v52 = vpop.f32.mrf.mxu0 }
 0x3df   :  { %v2356_v53 = vpop.f32.mrf.mxu1 }
 0x3e0   :  { %v2317_v36 = vpop.f32.mrf.mxu0  ;;  %v2357_v59 = vadd.f32 %v2356_v53, %v2315_v52 }
 0x3e1   :  { %v2358_v17 = vpop.f32.mrf.mxu1 }
 0x3e2   :  { %v2319_v54 = vpop.f32.mrf.mxu0  ;;  %v2359_v58 = vadd.f32 %v2358_v17, %v2317_v36  ;;  %v2445_v61 = vrot.slane %v2357_v59, 4 }
 0x3e3   :  { %v2360_v55 = vpop.f32.mrf.mxu1 }
 0x3e4   :  { %v2320_v56 = vpop.f32.mrf.mxu0  ;;  %v2451_v60 = vrot.slane %v2359_v58, 4  ;;  %v2446_v41 = vadd.f32 %v2445_v61, %v2357_v59 }
 0x3e5   :  { %v2361_v57 = vpop.f32.mrf.mxu1 }
 0x3e6   :  { %v2452_v62 = vadd.f32 %v2451_v60, %v2359_v58  ;;  %v2447_v1 = vrot.slane %v2446_v41, 2 }
 0x3e8   :  { %v2453_v18 = vrot.slane %v2452_v62, 2  ;;  %v2448_v48 = vadd.f32 %v2447_v1, %v2446_v41 }
 0x3ea   :  { %v2454_v2 = vadd.f32 %v2453_v18, %v2452_v62  ;;  %v2449_v49 = vrot.slane %v2448_v48, 1 }
 0x3ec   :  { %v2455_v63 = vrot.slane %v2454_v2, 1  ;;  %v2450_v4 = vadd.f32 %v2449_v49, %v2448_v48 }
 0x3ee   :  { %v2456_v3 = vadd.f32 %v2455_v63, %v2454_v2  ;;  %v2469_v8 = vmul.f32 0.125, %v2450_v4 }
 0x3f0   :  { %v2470_v7 = vmul.f32 0.125, %v2456_v3  ;;  %v3758_v0 = vsub.f32 %v2357_v59, %v2469_v8 }
 0x3f2   :  { %v3756_v9 = vsub.f32 %v2359_v58, %v2470_v7  ;;  %v2477_v16 = vmul.f32 %v3758_v0, %v3758_v0 }
 0x3f4   :  { %v2478_v10 = vmul.f32 %v3756_v9, %v3756_v9  ;;  %v2481_v21 = vrot.slane %v2477_v16, 4 }
 0x3f6   :  { %v2487_v5 = vrot.slane %v2478_v10, 4  ;;  %v2482_v23 = vadd.f32 %v2481_v21, %v2477_v16 }
 0x3f8   :  { %v2488_v22 = vadd.f32 %v2487_v5, %v2478_v10  ;;  %v2483_v25 = vrot.slane %v2482_v23, 2 }
 0x3fa   :  { %v2489_v24 = vrot.slane %v2488_v22, 2  ;;  %v2484_v34 = vadd.f32 %v2483_v25, %v2482_v23  ;;  %v2521_v23 = vld [vmem:[#allocation14] sm:$0xf] }
 0x3fb   :  { %v2530_v25 = vrot.slane %v2521_v23, %v3668_v14 }
 0x3fc   :  { %v2490_v28 = vadd.f32 %v2489_v24, %v2488_v22  ;;  %v2485_v45 = vrot.slane %v2484_v34, 1 }
 0x3fe   :  { %v2491_v40 = vrot.slane %v2490_v28, 1  ;;  %v2486_v31 = vadd.f32 %v2485_v45, %v2484_v34 }
 0x400   :  { %v2492_v38 = vadd.f32 %v2491_v40, %v2490_v28  ;;  %v2505_v36 = vmul.f32 0.125, %v2486_v31  ;;  %v2526_v28 = vrot.slane %v2521_v23, %v3664_v11 }
 0x402   :  { %v2506_v51 = vmul.f32 0.125, %v2492_v38  ;;  %v2509_v58 = vadd.f32 1e-05, %v2505_v36 }
 0x404   :  { %v2510_v55 = vadd.f32 1e-05, %v2506_v51 }
 0x406   :  { %3329 = vrsqrt.f32 %v2510_v55 }
 0x407   :  { %3331 = vrsqrt.f32 %v2509_v58 }
 0x413   :  { %v3330_v16 = vpop.eup %3329 }
 0x414   :  { %v3332_v22 = vpop.eup %3331  ;;  %v2518_v24 = vmul.f32 %v3330_v16, %v3756_v9  ;;  %v2534_v9 = vrot.slane %v2521_v23, %v3666_v12 }
 0x41e   :  { %v2397_v26 = vpop.f32.mrf.mxu0 }
 0x41f   :  { %v2438_v27 = vpop.f32.mrf.mxu1 }
 0x420   :  { %v2439_v29 = vadd.f32 %v2438_v27, %v2397_v26  ;;  %v2399_v30 = vpop.f32.mrf.mxu0  ;;  %v2517_v27 = vmul.f32 %v3332_v22, %v3758_v0 }
 0x421   :  { %v2440_v33 = vpop.f32.mrf.mxu1 }
 0x422   :  { %v2457_v35 = vrot.slane %v2439_v29, 4  ;;  %v2441_v37 = vadd.f32 %v2440_v33, %v2399_v30  ;;  %v2401_v13 = vpop.f32.mrf.mxu0  ;;  %v2544_v30 = vmul.f32 %v2530_v25, %v2518_v24  ;;  %v2543_v34 = vmul.f32 %v2526_v28, %v2517_v27 }
 0x423   :  { %v2442_v39 = vpop.f32.mrf.mxu1 }
 0x424   :  { %v2458_v19 = vadd.f32 %v2457_v35, %v2439_v29  ;;  %v2463_v42 = vrot.slane %v2441_v37, 4  ;;  %v2402_v43 = vpop.f32.mrf.mxu0 }
 0x425   :  { %v2443_v44 = vpop.f32.mrf.mxu1 }
 0x426   :  { %v2459_v46 = vrot.slane %v2458_v19, 2  ;;  %v2464_v47 = vadd.f32 %v2463_v42, %v2441_v37  ;;  %v2538_v42 = vrot.slane %v2521_v23, %v3670_v15  ;;  %v2581_v44 = vld [vmem:[%s3796_s12] sm:$0xf] }
 0x427   :  { %v2586_v51 = vrot.slane %v2581_v44, %v3664_v11  ;;  %v2594_v36 = vrot.slane %v2581_v44, %v3666_v12 }
 0x428   :  { %v2460_v6 = vadd.f32 %v2459_v46, %v2458_v19  ;;  %v2465_v20 = vrot.slane %v2464_v47, 2  ;;  %v2590_v46 = vrot.slane %v2581_v44, %v3668_v14 }
 0x42a   :  { %v2461_v50 = vrot.slane %v2460_v6, 1  ;;  %v2466_v32 = vadd.f32 %v2465_v20, %v2464_v47 }
 0x42c   :  { %v2462_v52 = vadd.f32 %v2461_v50, %v2460_v6  ;;  %v2467_v53 = vrot.slane %v2466_v32, 1 }
 0x42e   :  { %v2471_v17 = vmul.f32 0.125, %v2462_v52  ;;  %v2468_v54 = vadd.f32 %v2467_v53, %v2466_v32 }
 0x430   :  { %v2475_v56 = vsub.f32 %v2439_v29, %v2471_v17  ;;  %v2472_v57 = vmul.f32 0.125, %v2468_v54  ;;  %v2547_v29 = vld [vmem:[#allocation16] sm:$0xf] }
 0x431   :  { %v2556_v33 = vrot.slane %v2547_v29, %v3668_v14  ;;  %v2552_v35 = vrot.slane %v2547_v29, %v3664_v11  ;;  %v2560_v0 = vrot.slane %v2547_v29, %v3666_v12  ;;  %v2564_v6 = vrot.slane %v2547_v29, %v3670_v15 }
 0x432   :  { %v2479_v59 = vmul.f32 %v2475_v56, %v2475_v56  ;;  %v2476_v60 = vsub.f32 %v2441_v37, %v2472_v57 }
 0x433   :  { %v2570_v37 = vadd.f32 %v2556_v33, %v2544_v30  ;;  %v2569_v13 = vadd.f32 %v2552_v35, %v2543_v34 }
 0x434   :  { %v2493_v61 = vrot.slane %v2479_v59, 4  ;;  %v2480_v62 = vmul.f32 %v2476_v60, %v2476_v60 }
 0x435   :  { %v2574_v39 = vmul.f32 0.01, %v2570_v37  ;;  %v2573_v43 = vmul.f32 0.01, %v2569_v13 }
 0x436   :  { %v2494_v41 = vadd.f32 %v2493_v61, %v2479_v59  ;;  %v2499_v18 = vrot.slane %v2480_v62, 4 }
 0x437   :  { %v2578_v20 = vmax.f32 %v2570_v37, %v2574_v39  ;;  %v2577_v32 = vmax.f32 %v2569_v13, %v2573_v43 }
 0x438   :  { %v2495_v1 = vrot.slane %v2494_v41, 2  ;;  %v2500_v2 = vadd.f32 %v2499_v18, %v2480_v62 }
 0x439   :  { %v2604_v17 = vmul.f32 %v2590_v46, %v2578_v20  ;;  %v2603_v14 = vmul.f32 %v2586_v51, %v2577_v32 }
 0x43a   :  { %v2496_v48 = vadd.f32 %v2495_v1, %v2494_v41  ;;  %v2501_v63 = vrot.slane %v2500_v2, 2  ;;  %v2909_v41 = vld [vmem:[#allocation5] ss:$0 sm:$0xff] }
 0x43b   :  { %v2607_v59 = vadd.f32 %v2604_v17, %v2603_v14 }
 0x43c   :  { %v2497_v49 = vrot.slane %v2496_v48, 1  ;;  %v2502_v3 = vadd.f32 %v2501_v63, %v2500_v2 }
 0x43e   :  { %v2498_v4 = vadd.f32 %v2497_v49, %v2496_v48  ;;  %v2503_v7 = vrot.slane %v2502_v3, 1 }
 0x440   :  { %v2507_v8 = vmul.f32 0.125, %v2498_v4  ;;  %v2504_v10 = vadd.f32 %v2503_v7, %v2502_v3 }
 0x442   :  { %v2511_v5 = vadd.f32 1e-05, %v2507_v8  ;;  %v2508_v21 = vmul.f32 0.125, %v2504_v10 }
 0x444   :  { %3333 = vrsqrt.f32 %v2511_v5  ;;  %v2512_v26 = vadd.f32 1e-05, %v2508_v21 }
 0x446   :  { %3335 = vrsqrt.f32 %v2512_v26 }
 0x451   :  { %v3334_v40 = vpop.eup %3333 }
 0x452   :  { %v2519_v19 = vmul.f32 %v3334_v40, %v2475_v56  ;;  %v2598_v56 = vrot.slane %v2581_v44, %v3670_v15 }
 0x453   :  { %v3336_v45 = vpop.eup %3335 }
 0x454   :  { %v2545_v47 = vmul.f32 %v2534_v9, %v2519_v19  ;;  %v2520_v38 = vmul.f32 %v3336_v45, %v2476_v60 }
 0x456   :  { %v2546_v31 = vmul.f32 %v2538_v42, %v2520_v38  ;;  %v2571_v50 = vadd.f32 %v2560_v0, %v2545_v47 }
 0x458   :  { %v2572_v52 = vadd.f32 %v2564_v6, %v2546_v31  ;;  %v2575_v53 = vmul.f32 0.01, %v2571_v50 }
 0x45a   :  { %v2576_v54 = vmul.f32 0.01, %v2572_v52  ;;  %v2579_v55 = vmax.f32 %v2571_v50, %v2575_v53 }
 0x45c   :  { %v2580_v57 = vmax.f32 %v2572_v52, %v2576_v54  ;;  %v2605_v58 = vmul.f32 %v2594_v36, %v2579_v55 }
 0x45e   :  { %v2606_v60 = vmul.f32 %v2598_v56, %v2580_v57  ;;  %v2608_v61 = vadd.f32 %v2607_v59, %v2605_v58 }
 0x460   :  { %v2609_v62 = vadd.f32 %v2608_v61, %v2606_v60 }
 0x462   :  { %2610 = vadd.xlane.f32.xlu0 %v2609_v62 }
 0x4eb   :  { %v2611_v18 = vpop.xlane.xlu0 %2610 }
 0x4ec   :  { %v2619_v11 = vadd.f32 %v2909_v41, %v2611_v18 }
 0x4ee   :  { %v2620_v1 = vmul.f32 0.5, %v2619_v11 }
 0x4f0   :  { %3337 = vtanh.f32 %v2620_v1 }
 0x4fd   :  { %v3338_v2 = vpop.eup %3337 }
 0x4fe   :  { %v2622_v12 = vadd.f32 1.0, %v3338_v2 }
 0x500   :  { %v2623_v48 = vmul.f32 0.5, %v2622_v12 }
 0x502   :  { %2625 = vst.msk [vmem:[%s3798_s14] sm:$0xff] %vm2624_vm1, %v2623_v48 }
 0x503   :  { %2630 = vsyncpa [#allocation7], 1 }
 0x504   :  { %2631 = vsyncpa [#allocation9], 1 }
 0x505   :  { %2632 = vsyncpa [#allocation12], 1 }
 0x506   :  { %2633 = vsyncpa [#allocation15], 1 }
 0x507   :  { %2634 = vsyncmov [#allocation4] }
 0x50a   :  { %s2635_s24 = vpop.sfrf %2634 }
 0x50b   :  { %p2910_p3 = scmp.ne.s32.totalorder %s2635_s24, 0 }
 0x50d   :  { %2639 = shalt.err (%p2910_p3)  }
 0x50e   :  { %2641 = vsyncmov [#allocation4 + $0x1] }
 0x511   :  { %s2642_s25 = vpop.sfrf %2641 }
 0x512   :  { %p2911_p4 = scmp.ne.s32.totalorder %s2642_s25, 0 }
 0x514   :  { %2646 = shalt.err (%p2911_p4)  }

</bundles_post_ra>
